<compile_context>
chip_gen: v7x
topology: tpu7x:2x2x1
jax: 0.10.0
libtpu: 0.0.40
codegen_flags: <defaults>
</compile_context>

<pallas_src>
import jax
import jax.numpy as jnp
from jax.experimental import pallas as pl
from jax.experimental.pallas import tpu as pltpu

NUM_LABELS = 30
HEAD_LANES = 128          # lane-dense head output; sliced back to NUM_LABELS on the host


def _sigmoid(x):
    # exact: sigmoid(x) == 0.5 * (tanh(x/2) + 1); cheaper on the EUP than the logistic form
    return 0.5 * (jnp.tanh(0.5 * x) + 1.0)


# --------------------------------------------------------------------------- #
# Kernel 1: inputs_embeds = word_embeddings[input_ids] + entity_embeddings[0]
# --------------------------------------------------------------------------- #
def _embed_fuse_kernel(ids_ref, word_hbm, ent_ref, out_ref, gbuf, sems):
    i = pl.program_id(0)
    tb = gbuf.shape[0]
    base = i * tb
    # issue all row-gather DMAs for this token block; they overlap each other
    for r in range(tb):
        pltpu.make_async_copy(word_hbm.at[ids_ref[base + r]],
                              gbuf.at[r], sems.at[r]).start()
    for r in range(tb):
        pltpu.make_async_copy(word_hbm.at[0], gbuf.at[r], sems.at[r]).wait()
    # one sublane-aligned (Tb, H) add + store; entity row broadcasts over the block
    out_ref[...] = gbuf[...] + ent_ref[...]


def entity_embedding_fuse(input_ids, entity_ids, word_table, entity_table,
                          *, tokens_per_block=32):
    """[B,S] int ids -> [B,S,H] fused embeddings (rows gathered straight from HBM)."""
    del entity_ids  # nn.Embedding(1, H): index 0 is the only valid entity id -> resident row
    B, S = input_ids.shape
    _, H = word_table.shape
    n = B * S

    tb = min(int(tokens_per_block), ((n + 7) // 8) * 8)
    tb = max(tb, 8)
    n_pad = ((n + tb - 1) // tb) * tb
    flat_ids = (jnp.zeros((n_pad,), jnp.int32)
                .at[:n].set(input_ids.reshape(n).astype(jnp.int32)))   # pad with row 0
    ent_row = entity_table[:1, :]                                      # (1, H)

    out = pl.pallas_call(
        _embed_fuse_kernel,
        out_shape=jax.ShapeDtypeStruct((n_pad, H), word_table.dtype),
        grid_spec=pltpu.PrefetchScalarGridSpec(
            num_scalar_prefetch=1,                 # ids land in SMEM
            grid=(n_pad // tb,),
            in_specs=[
                pl.BlockSpec(memory_space=pl.ANY),               # word_table stays in HBM
                pl.BlockSpec((1, H), lambda i, ids: (0, 0)),     # resident entity row
            ],
            out_specs=pl.BlockSpec((tb, H), lambda i, ids: (i, 0)),
            scratch_shapes=[pltpu.VMEM((tb, H), word_table.dtype),
                            pltpu.SemaphoreType.DMA((tb,))],
        ),
        compiler_params=pltpu.CompilerParams(
            dimension_semantics=("parallel",),
            vmem_limit_bytes=32 * 1024 * 1024),
    )(flat_ids, word_table, ent_row)
    return out[:n].reshape(B, S, H)


# --------------------------------------------------------------------------- #
# Kernel 2: forward-LSTM recurrence + fused head on LM hidden states
# --------------------------------------------------------------------------- #
def _lstm_fwd_head_kernel(gx_ref,     # (1, Bb, 4H) bf16  fwd pre-acts x@W_ih+b at step t
                          whh_ref,    # (H, 4H)     bf16  fused recurrent weights (i,f,g,o)
                          wlin_ref,   # (H, 128)    bf16  head weights, forward half, lane-padded
                          bwd_ref,    # (Bb, 128)   f32   precomputed h_bwd @ W_lin[H:] + b_lin
                          out_ref,    # (Bb, 128)   f32   logits (lane-padded)
                          h_ref, c_ref):             # (Bb, H) f32 scratch carried over time
    t = pl.program_id(1)
    H = h_ref.shape[-1]

    @pl.when(t == 0)
    def _first_step():
        # h0 == c0 == 0  ->  the recurrent matmul contributes nothing; skip it.
        gx = gx_ref[0].astype(jnp.float32)
        i = _sigmoid(gx[:, 0 * H:1 * H])
        g = jnp.tanh(gx[:, 2 * H:3 * H])
        o = _sigmoid(gx[:, 3 * H:4 * H])
        c_new = i * g                                # f * c0 == 0
        c_ref[...] = c_new
        h_ref[...] = o * jnp.tanh(c_new)

    @pl.when(t > 0)
    def _recurrent_step():
        h_prev = h_ref[...].astype(jnp.bfloat16)
        # ONE fused (Bb,H)x(H,4H) dot per step; gate slices at k*H are lane-aligned (H%128==0)
        pre = gx_ref[0].astype(jnp.float32) + jnp.dot(
            h_prev, whh_ref[...], preferred_element_type=jnp.float32)
        i = _sigmoid(pre[:, 0 * H:1 * H])
        f = _sigmoid(pre[:, 1 * H:2 * H])
        g = jnp.tanh(pre[:, 2 * H:3 * H])
        o = _sigmoid(pre[:, 3 * H:4 * H])
        c_new = f * c_ref[...] + i * g
        c_ref[...] = c_new
        h_ref[...] = o * jnp.tanh(c_new)

    # NOTE: keep this last in program order so that S == 1 reads the h just written above.
    @pl.when(t == pl.num_programs(1) - 1)
    def _finalize():
        out_ref[...] = (jnp.dot(h_ref[...].astype(jnp.bfloat16), wlin_ref[...],
                                preferred_element_type=jnp.float32)
                        + bwd_ref[...])


def bilstm_classifier_head(hidden_states, params):
    """hidden_states: [B, S, H] f32 (LM last_hidden_state). Returns logits [B, 30]."""
    B, S, H = hidden_states.shape
    if S < 1:
        raise ValueError("sequence length must be >= 1")
    if H % 128 != 0:
        raise ValueError("hidden size must be a multiple of 128 (RoBERTa: 768 / 1024)")

    # batch blocking: sublane-aligned, up to 128 MXU rows per block
    # TODO(synk): on v7x (2 TensorCores) split a single-block batch into >=2 blocks so both
    # cores run independent recurrences; on v5e/v6e one 128-row block keeps the MXU best fed.
    b_blk = ((B + 7) // 8) * 8 if B <= 128 else 128
    b_pad = ((B + b_blk - 1) // b_blk) * b_blk

    x = hidden_states.astype(jnp.float32)
    if b_pad != B:
        x = jnp.pad(x, ((0, b_pad - B), (0, 0), (0, 0)))
    x_bf = x.astype(jnp.bfloat16)
    x_t = jnp.transpose(x_bf, (1, 0, 2))                       # [S, Bp, H] (4x smaller than gx)

    # ---- hoisted forward input projection: ONE big bf16 MXU matmul, natural layout,
    #      streamed to the kernel in bf16 ----
    wih_f = params["w_ih_fwd"].astype(jnp.bfloat16)            # (H, 4H), gates i,f,g,o
    gx = jnp.einsum("sbh,hk->sbk", x_t, wih_f, preferred_element_type=jnp.float32)
    gx = (gx + params["b_fwd"]).astype(jnp.bfloat16)           # [S, Bp, 4H] bf16

    # ---- backward direction: one step on x[S-1] from a zero state -> no recurrence, so the
    #      whole thing (including its head contribution) is computed outside the kernel ----
    wih_b = params["w_ih_bwd"].astype(jnp.bfloat16)
    gxb = jnp.einsum("bh,hk->bk", x_bf[:, -1, :], wih_b,
                     preferred_element_type=jnp.float32) + params["b_bwd"]   # (Bp, 4H) f32
    ib = _sigmoid(gxb[:, 0 * H:1 * H])
    gb = jnp.tanh(gxb[:, 2 * H:3 * H])
    ob = _sigmoid(gxb[:, 3 * H:4 * H])
    h_bwd = ob * jnp.tanh(ib * gb)                                           # (Bp, H) f32

    # lane-padded Linear(2H, 30); backward half folded into a precomputed contribution
    wlin = (jnp.zeros((2 * H, HEAD_LANES), jnp.float32)
            .at[:, :NUM_LABELS].set(params["w_lin"]))
    blin = jnp.zeros((1, HEAD_LANES), jnp.float32).at[:, :NUM_LABELS].set(params["b_lin"])
    bwd_contrib = (jnp.dot(h_bwd.astype(jnp.bfloat16), wlin[H:].astype(jnp.bfloat16),
                           preferred_element_type=jnp.float32) + blin)       # (Bp, 128) f32
    wlin_fwd = wlin[:H].astype(jnp.bfloat16)                                 # (H, 128)

    whh = params["w_hh_fwd"].astype(jnp.bfloat16)                            # (H, 4H) fused

    out = pl.pallas_call(
        _lstm_fwd_head_kernel,
        out_shape=jax.ShapeDtypeStruct((b_pad, HEAD_LANES), jnp.float32),
        grid=(b_pad // b_blk, S),
        in_specs=[
            pl.BlockSpec((1, b_blk, 4 * H), lambda b, t: (t, b, 0)),   # gx: streamed over t
            pl.BlockSpec((H, 4 * H), lambda b, t: (0, 0)),             # W_hh (resident)
            pl.BlockSpec((H, HEAD_LANES), lambda b, t: (0, 0)),        # W_lin fwd half
            pl.BlockSpec((b_blk, HEAD_LANES), lambda b, t: (b, 0)),    # bwd head contribution
        ],
        out_specs=pl.BlockSpec((b_blk, HEAD_LANES), lambda b, t: (b, 0)),
        scratch_shapes=[pltpu.VMEM((b_blk, H), jnp.float32),           # h carry
                        pltpu.VMEM((b_blk, H), jnp.float32)],          # c carry
        compiler_params=pltpu.CompilerParams(
            dimension_semantics=("parallel", "arbitrary"),
            vmem_limit_bytes=32 * 1024 * 1024),
    )(gx, whh, wlin_fwd, bwd_contrib)
    return out[:B, :NUM_LABELS]


def init_params(key, hidden_size):
    """Deterministic parameters matching the module's shapes / init scheme."""
    H = hidden_size
    ks = jax.random.split(key, 9)
    bound = 1.0 / jnp.sqrt(jnp.float32(H))       # PyTorch LSTM default init range

    def u(k, shape):
        return jax.random.uniform(k, shape, jnp.float32, -bound, bound)

    return {
        # LSTM weights pre-transposed for x @ W; gate order [i, f, g, o] along 4H.
        "w_ih_fwd": u(ks[0], (H, 4 * H)),
        "w_hh_fwd": u(ks[1], (H, 4 * H)),
        "b_fwd":    u(ks[2], (1, 4 * H)) + u(ks[3], (1, 4 * H)),   # b_ih + b_hh folded
        "w_ih_bwd": u(ks[4], (H, 4 * H)),
        "w_hh_bwd": u(ks[5], (H, 4 * H)),   # multiplies a zero state at t=S-1 -> not needed
        "b_bwd":    u(ks[6], (1, 4 * H)) + u(ks[7], (1, 4 * H)),
        # Linear(2H, 30): weight ~ N(0, 0.5), bias = 0
        "w_lin":    jax.random.normal(ks[8], (2 * H, NUM_LABELS), jnp.float32) * 0.5,
        "b_lin":    jnp.zeros((1, NUM_LABELS), jnp.float32),
    }


if __name__ == "__main__":
    # TODO(synk): the pretrained AutoModelForSequenceClassification backbone (RoBERTa
    # encoder + head) is not reproducible without a checkpoint; the fused inputs_embeds
    # stand in for its last_hidden_state and feed the previously-reviewed sequence head.
    B, S, H, VOCAB = 2, 8, 128, 64
    key = jax.random.PRNGKey(0)
    k_ids, k_word, k_ent, k_p = jax.random.split(key, 4)

    input_ids = jax.random.randint(k_ids, (B, S), 0, VOCAB, dtype=jnp.int32)
    entity_ids = jnp.zeros((B, S), jnp.int32)                 # nn.Embedding(1, H) -> index 0

    word_table = jax.random.normal(k_word, (VOCAB, H), jnp.float32) * 0.02
    entity_table = jax.random.normal(k_ent, (1, H), jnp.float32) * 0.5   # normal_(0.0, 0.5)

    params = init_params(k_p, H)

    inputs_embeds = entity_embedding_fuse(input_ids, entity_ids, word_table, entity_table)
    hidden_states = inputs_embeds                             # stand-in LM hidden states
    logits = bilstm_classifier_head(hidden_states, params)

    jax.block_until_ready((inputs_embeds, logits))
    assert inputs_embeds.shape == (B, S, H)
    assert logits.shape == (B, NUM_LABELS)
    print("KERNEL_OK")
</pallas_src>

<mosaic_0001>
module attributes {stable_mosaic.version = 11 : i64} {
  func.func @_embed_fuse_kernel(%arg0: i32, %arg1: memref<16xi32, #tpu.memory_space<smem>>, %arg2: memref<64x128xf32, #tpu.memory_space<any>>, %arg3: memref<1x128xf32, #tpu.memory_space<vmem>>, %arg4: memref<16x128xf32, #tpu.memory_space<vmem>>, %arg5: memref<16x128xf32, #tpu.memory_space<vmem>>, %arg6: memref<16x!tpu.dma_semaphore, #tpu.memory_space<semaphore_mem>>) attributes {dimension_semantics = [#tpu.dimension_semantics<parallel>], iteration_bounds = array<i64: 1>, scalar_prefetch = 1 : i64, scratch_operands = 2 : i64, tpu.core_type = #tpu.core_type<tc>, window_params = [{}, {pipeline_mode = #tpu.pipeline_mode<synchronous>, transform_indices = @transform_1, window_bounds = array<i64: 1, 128>}, {transform_indices = @transform_2, window_bounds = array<i64: 16, 128>}]} {
    %c16_i32 = arith.constant 16 : i32
    %0 = arith.muli %arg0, %c16_i32 : i32
    %c0_i32 = arith.constant 0 : i32
    %1 = arith.addi %0, %c0_i32 : i32
    %2 = arith.index_cast %1 : i32 to index
    %3 = memref.load %arg1[%2] : memref<16xi32, #tpu.memory_space<smem>>
    %c0_i32_0 = arith.constant 0 : i32
    %c0_i32_1 = arith.constant 0 : i32
    %c0_i32_2 = arith.constant 0 : i32
    %4 = tpu.memref_slice %arg2[%3, %c0_i32_2] : memref<64x128xf32, #tpu.memory_space<any>> -> memref<1x128xf32, #tpu.memory_space<any>>
    %5 = tpu.memref_squeeze %4 : memref<1x128xf32, #tpu.memory_space<any>> -> memref<128xf32, #tpu.memory_space<any>>
    %c0_i32_3 = arith.constant 0 : i32
    %6 = tpu.memref_slice %arg5[%c0_i32_0, %c0_i32_3] : memref<16x128xf32, #tpu.memory_space<vmem>> -> memref<1x128xf32, #tpu.memory_space<vmem>>
    %7 = tpu.memref_squeeze %6 : memref<1x128xf32, #tpu.memory_space<vmem>> -> memref<128xf32, #tpu.memory_space<vmem>>
    %8 = tpu.memref_slice %arg6[%c0_i32_1] : memref<16x!tpu.dma_semaphore, #tpu.memory_space<semaphore_mem>> -> memref<1x!tpu.dma_semaphore, #tpu.memory_space<semaphore_mem>>
    %9 = tpu.memref_squeeze %8 : memref<1x!tpu.dma_semaphore, #tpu.memory_space<semaphore_mem>> -> memref<!tpu.dma_semaphore, #tpu.memory_space<semaphore_mem>>
    tpu.enqueue_dma source(%5 : memref<128xf32, #tpu.memory_space<any>>) target(%7 : memref<128xf32, #tpu.memory_space<vmem>>) target_semaphore(%9 : memref<!tpu.dma_semaphore, #tpu.memory_space<semaphore_mem>>)
    %c1_i32 = arith.constant 1 : i32
    %10 = arith.addi %0, %c1_i32 : i32
    %11 = arith.index_cast %10 : i32 to index
    %12 = memref.load %arg1[%11] : memref<16xi32, #tpu.memory_space<smem>>
    %c1_i32_4 = arith.constant 1 : i32
    %c1_i32_5 = arith.constant 1 : i32
    %c0_i32_6 = arith.constant 0 : i32
    %13 = tpu.memref_slice %arg2[%12, %c0_i32_6] : memref<64x128xf32, #tpu.memory_space<any>> -> memref<1x128xf32, #tpu.memory_space<any>>
    %14 = tpu.memref_squeeze %13 : memref<1x128xf32, #tpu.memory_space<any>> -> memref<128xf32, #tpu.memory_space<any>>
    %c0_i32_7 = arith.constant 0 : i32
    %15 = tpu.memref_slice %arg5[%c1_i32_4, %c0_i32_7] : memref<16x128xf32, #tpu.memory_space<vmem>> -> memref<1x128xf32, #tpu.memory_space<vmem>>
    %16 = tpu.memref_squeeze %15 : memref<1x128xf32, #tpu.memory_space<vmem>> -> memref<128xf32, #tpu.memory_space<vmem>>
    %17 = tpu.memref_slice %arg6[%c1_i32_5] : memref<16x!tpu.dma_semaphore, #tpu.memory_space<semaphore_mem>> -> memref<1x!tpu.dma_semaphore, #tpu.memory_space<semaphore_mem>>
    %18 = tpu.memref_squeeze %17 : memref<1x!tpu.dma_semaphore, #tpu.memory_space<semaphore_mem>> -> memref<!tpu.dma_semaphore, #tpu.memory_space<semaphore_mem>>
    tpu.enqueue_dma source(%14 : memref<128xf32, #tpu.memory_space<any>>) target(%16 : memref<128xf32, #tpu.memory_space<vmem>>) target_semaphore(%18 : memref<!tpu.dma_semaphore, #tpu.memory_space<semaphore_mem>>)
    %c2_i32 = arith.constant 2 : i32
    %19 = arith.addi %0, %c2_i32 : i32
    %20 = arith.index_cast %19 : i32 to index
    %21 = memref.load %arg1[%20] : memref<16xi32, #tpu.memory_space<smem>>
    %c2_i32_8 = arith.constant 2 : i32
    %c2_i32_9 = arith.constant 2 : i32
    %c0_i32_10 = arith.constant 0 : i32
    %22 = tpu.memref_slice %arg2[%21, %c0_i32_10] : memref<64x128xf32, #tpu.memory_space<any>> -> memref<1x128xf32, #tpu.memory_space<any>>
    %23 = tpu.memref_squeeze %22 : memref<1x128xf32, #tpu.memory_space<any>> -> memref<128xf32, #tpu.memory_space<any>>
    %c0_i32_11 = arith.constant 0 : i32
    %24 = tpu.memref_slice %arg5[%c2_i32_8, %c0_i32_11] : memref<16x128xf32, #tpu.memory_space<vmem>> -> memref<1x128xf32, #tpu.memory_space<vmem>>
    %25 = tpu.memref_squeeze %24 : memref<1x128xf32, #tpu.memory_space<vmem>> -> memref<128xf32, #tpu.memory_space<vmem>>
    %26 = tpu.memref_slice %arg6[%c2_i32_9] : memref<16x!tpu.dma_semaphore, #tpu.memory_space<semaphore_mem>> -> memref<1x!tpu.dma_semaphore, #tpu.memory_space<semaphore_mem>>
    %27 = tpu.memref_squeeze %26 : memref<1x!tpu.dma_semaphore, #tpu.memory_space<semaphore_mem>> -> memref<!tpu.dma_semaphore, #tpu.memory_space<semaphore_mem>>
    tpu.enqueue_dma source(%23 : memref<128xf32, #tpu.memory_space<any>>) target(%25 : memref<128xf32, #tpu.memory_space<vmem>>) target_semaphore(%27 : memref<!tpu.dma_semaphore, #tpu.memory_space<semaphore_mem>>)
    %c3_i32 = arith.constant 3 : i32
    %28 = arith.addi %0, %c3_i32 : i32
    %29 = arith.index_cast %28 : i32 to index
    %30 = memref.load %arg1[%29] : memref<16xi32, #tpu.memory_space<smem>>
    %c3_i32_12 = arith.constant 3 : i32
    %c3_i32_13 = arith.constant 3 : i32
    %c0_i32_14 = arith.constant 0 : i32
    %31 = tpu.memref_slice %arg2[%30, %c0_i32_14] : memref<64x128xf32, #tpu.memory_space<any>> -> memref<1x128xf32, #tpu.memory_space<any>>
    %32 = tpu.memref_squeeze %31 : memref<1x128xf32, #tpu.memory_space<any>> -> memref<128xf32, #tpu.memory_space<any>>
    %c0_i32_15 = arith.constant 0 : i32
    %33 = tpu.memref_slice %arg5[%c3_i32_12, %c0_i32_15] : memref<16x128xf32, #tpu.memory_space<vmem>> -> memref<1x128xf32, #tpu.memory_space<vmem>>
    %34 = tpu.memref_squeeze %33 : memref<1x128xf32, #tpu.memory_space<vmem>> -> memref<128xf32, #tpu.memory_space<vmem>>
    %35 = tpu.memref_slice %arg6[%c3_i32_13] : memref<16x!tpu.dma_semaphore, #tpu.memory_space<semaphore_mem>> -> memref<1x!tpu.dma_semaphore, #tpu.memory_space<semaphore_mem>>
    %36 = tpu.memref_squeeze %35 : memref<1x!tpu.dma_semaphore, #tpu.memory_space<semaphore_mem>> -> memref<!tpu.dma_semaphore, #tpu.memory_space<semaphore_mem>>
    tpu.enqueue_dma source(%32 : memref<128xf32, #tpu.memory_space<any>>) target(%34 : memref<128xf32, #tpu.memory_space<vmem>>) target_semaphore(%36 : memref<!tpu.dma_semaphore, #tpu.memory_space<semaphore_mem>>)
    %c4_i32 = arith.constant 4 : i32
    %37 = arith.addi %0, %c4_i32 : i32
    %38 = arith.index_cast %37 : i32 to index
    %39 = memref.load %arg1[%38] : memref<16xi32, #tpu.memory_space<smem>>
    %c4_i32_16 = arith.constant 4 : i32
    %c4_i32_17 = arith.constant 4 : i32
    %c0_i32_18 = arith.constant 0 : i32
    %40 = tpu.memref_slice %arg2[%39, %c0_i32_18] : memref<64x128xf32, #tpu.memory_space<any>> -> memref<1x128xf32, #tpu.memory_space<any>>
    %41 = tpu.memref_squeeze %40 : memref<1x128xf32, #tpu.memory_space<any>> -> memref<128xf32, #tpu.memory_space<any>>
    %c0_i32_19 = arith.constant 0 : i32
    %42 = tpu.memref_slice %arg5[%c4_i32_16, %c0_i32_19] : memref<16x128xf32, #tpu.memory_space<vmem>> -> memref<1x128xf32, #tpu.memory_space<vmem>>
    %43 = tpu.memref_squeeze %42 : memref<1x128xf32, #tpu.memory_space<vmem>> -> memref<128xf32, #tpu.memory_space<vmem>>
    %44 = tpu.memref_slice %arg6[%c4_i32_17] : memref<16x!tpu.dma_semaphore, #tpu.memory_space<semaphore_mem>> -> memref<1x!tpu.dma_semaphore, #tpu.memory_space<semaphore_mem>>
    %45 = tpu.memref_squeeze %44 : memref<1x!tpu.dma_semaphore, #tpu.memory_space<semaphore_mem>> -> memref<!tpu.dma_semaphore, #tpu.memory_space<semaphore_mem>>
    tpu.enqueue_dma source(%41 : memref<128xf32, #tpu.memory_space<any>>) target(%43 : memref<128xf32, #tpu.memory_space<vmem>>) target_semaphore(%45 : memref<!tpu.dma_semaphore, #tpu.memory_space<semaphore_mem>>)
    %c5_i32 = arith.constant 5 : i32
    %46 = arith.addi %0, %c5_i32 : i32
    %47 = arith.index_cast %46 : i32 to index
    %48 = memref.load %arg1[%47] : memref<16xi32, #tpu.memory_space<smem>>
    %c5_i32_20 = arith.constant 5 : i32
    %c5_i32_21 = arith.constant 5 : i32
    %c0_i32_22 = arith.constant 0 : i32
    %49 = tpu.memref_slice %arg2[%48, %c0_i32_22] : memref<64x128xf32, #tpu.memory_space<any>> -> memref<1x128xf32, #tpu.memory_space<any>>
    %50 = tpu.memref_squeeze %49 : memref<1x128xf32, #tpu.memory_space<any>> -> memref<128xf32, #tpu.memory_space<any>>
    %c0_i32_23 = arith.constant 0 : i32
    %51 = tpu.memref_slice %arg5[%c5_i32_20, %c0_i32_23] : memref<16x128xf32, #tpu.memory_space<vmem>> -> memref<1x128xf32, #tpu.memory_space<vmem>>
    %52 = tpu.memref_squeeze %51 : memref<1x128xf32, #tpu.memory_space<vmem>> -> memref<128xf32, #tpu.memory_space<vmem>>
    %53 = tpu.memref_slice %arg6[%c5_i32_21] : memref<16x!tpu.dma_semaphore, #tpu.memory_space<semaphore_mem>> -> memref<1x!tpu.dma_semaphore, #tpu.memory_space<semaphore_mem>>
    %54 = tpu.memref_squeeze %53 : memref<1x!tpu.dma_semaphore, #tpu.memory_space<semaphore_mem>> -> memref<!tpu.dma_semaphore, #tpu.memory_space<semaphore_mem>>
    tpu.enqueue_dma source(%50 : memref<128xf32, #tpu.memory_space<any>>) target(%52 : memref<128xf32, #tpu.memory_space<vmem>>) target_semaphore(%54 : memref<!tpu.dma_semaphore, #tpu.memory_space<semaphore_mem>>)
    %c6_i32 = arith.constant 6 : i32
    %55 = arith.addi %0, %c6_i32 : i32
    %56 = arith.index_cast %55 : i32 to index
    %57 = memref.load %arg1[%56] : memref<16xi32, #tpu.memory_space<smem>>
    %c6_i32_24 = arith.constant 6 : i32
    %c6_i32_25 = arith.constant 6 : i32
    %c0_i32_26 = arith.constant 0 : i32
    %58 = tpu.memref_slice %arg2[%57, %c0_i32_26] : memref<64x128xf32, #tpu.memory_space<any>> -> memref<1x128xf32, #tpu.memory_space<any>>
    %59 = tpu.memref_squeeze %58 : memref<1x128xf32, #tpu.memory_space<any>> -> memref<128xf32, #tpu.memory_space<any>>
    %c0_i32_27 = arith.constant 0 : i32
    %60 = tpu.memref_slice %arg5[%c6_i32_24, %c0_i32_27] : memref<16x128xf32, #tpu.memory_space<vmem>> -> memref<1x128xf32, #tpu.memory_space<vmem>>
    %61 = tpu.memref_squeeze %60 : memref<1x128xf32, #tpu.memory_space<vmem>> -> memref<128xf32, #tpu.memory_space<vmem>>
    %62 = tpu.memref_slice %arg6[%c6_i32_25] : memref<16x!tpu.dma_semaphore, #tpu.memory_space<semaphore_mem>> -> memref<1x!tpu.dma_semaphore, #tpu.memory_space<semaphore_mem>>
    %63 = tpu.memref_squeeze %62 : memref<1x!tpu.dma_semaphore, #tpu.memory_space<semaphore_mem>> -> memref<!tpu.dma_semaphore, #tpu.memory_space<semaphore_mem>>
    tpu.enqueue_dma source(%59 : memref<128xf32, #tpu.memory_space<any>>) target(%61 : memref<128xf32, #tpu.memory_space<vmem>>) target_semaphore(%63 : memref<!tpu.dma_semaphore, #tpu.memory_space<semaphore_mem>>)
    %c7_i32 = arith.constant 7 : i32
    %64 = arith.addi %0, %c7_i32 : i32
    %65 = arith.index_cast %64 : i32 to index
    %66 = memref.load %arg1[%65] : memref<16xi32, #tpu.memory_space<smem>>
    %c7_i32_28 = arith.constant 7 : i32
    %c7_i32_29 = arith.constant 7 : i32
    %c0_i32_30 = arith.constant 0 : i32
    %67 = tpu.memref_slice %arg2[%66, %c0_i32_30] : memref<64x128xf32, #tpu.memory_space<any>> -> memref<1x128xf32, #tpu.memory_space<any>>
    %68 = tpu.memref_squeeze %67 : memref<1x128xf32, #tpu.memory_space<any>> -> memref<128xf32, #tpu.memory_space<any>>
    %c0_i32_31 = arith.constant 0 : i32
    %69 = tpu.memref_slice %arg5[%c7_i32_28, %c0_i32_31] : memref<16x128xf32, #tpu.memory_space<vmem>> -> memref<1x128xf32, #tpu.memory_space<vmem>>
    %70 = tpu.memref_squeeze %69 : memref<1x128xf32, #tpu.memory_space<vmem>> -> memref<128xf32, #tpu.memory_space<vmem>>
    %71 = tpu.memref_slice %arg6[%c7_i32_29] : memref<16x!tpu.dma_semaphore, #tpu.memory_space<semaphore_mem>> -> memref<1x!tpu.dma_semaphore, #tpu.memory_space<semaphore_mem>>
    %72 = tpu.memref_squeeze %71 : memref<1x!tpu.dma_semaphore, #tpu.memory_space<semaphore_mem>> -> memref<!tpu.dma_semaphore, #tpu.memory_space<semaphore_mem>>
    tpu.enqueue_dma source(%68 : memref<128xf32, #tpu.memory_space<any>>) target(%70 : memref<128xf32, #tpu.memory_space<vmem>>) target_semaphore(%72 : memref<!tpu.dma_semaphore, #tpu.memory_space<semaphore_mem>>)
    %c8_i32 = arith.constant 8 : i32
    %73 = arith.addi %0, %c8_i32 : i32
    %74 = arith.index_cast %73 : i32 to index
    %75 = memref.load %arg1[%74] : memref<16xi32, #tpu.memory_space<smem>>
    %c8_i32_32 = arith.constant 8 : i32
    %c8_i32_33 = arith.constant 8 : i32
    %c0_i32_34 = arith.constant 0 : i32
    %76 = tpu.memref_slice %arg2[%75, %c0_i32_34] : memref<64x128xf32, #tpu.memory_space<any>> -> memref<1x128xf32, #tpu.memory_space<any>>
    %77 = tpu.memref_squeeze %76 : memref<1x128xf32, #tpu.memory_space<any>> -> memref<128xf32, #tpu.memory_space<any>>
    %c0_i32_35 = arith.constant 0 : i32
    %78 = tpu.memref_slice %arg5[%c8_i32_32, %c0_i32_35] : memref<16x128xf32, #tpu.memory_space<vmem>> -> memref<1x128xf32, #tpu.memory_space<vmem>>
    %79 = tpu.memref_squeeze %78 : memref<1x128xf32, #tpu.memory_space<vmem>> -> memref<128xf32, #tpu.memory_space<vmem>>
    %80 = tpu.memref_slice %arg6[%c8_i32_33] : memref<16x!tpu.dma_semaphore, #tpu.memory_space<semaphore_mem>> -> memref<1x!tpu.dma_semaphore, #tpu.memory_space<semaphore_mem>>
    %81 = tpu.memref_squeeze %80 : memref<1x!tpu.dma_semaphore, #tpu.memory_space<semaphore_mem>> -> memref<!tpu.dma_semaphore, #tpu.memory_space<semaphore_mem>>
    tpu.enqueue_dma source(%77 : memref<128xf32, #tpu.memory_space<any>>) target(%79 : memref<128xf32, #tpu.memory_space<vmem>>) target_semaphore(%81 : memref<!tpu.dma_semaphore, #tpu.memory_space<semaphore_mem>>)
    %c9_i32 = arith.constant 9 : i32
    %82 = arith.addi %0, %c9_i32 : i32
    %83 = arith.index_cast %82 : i32 to index
    %84 = memref.load %arg1[%83] : memref<16xi32, #tpu.memory_space<smem>>
    %c9_i32_36 = arith.constant 9 : i32
    %c9_i32_37 = arith.constant 9 : i32
    %c0_i32_38 = arith.constant 0 : i32
    %85 = tpu.memref_slice %arg2[%84, %c0_i32_38] : memref<64x128xf32, #tpu.memory_space<any>> -> memref<1x128xf32, #tpu.memory_space<any>>
    %86 = tpu.memref_squeeze %85 : memref<1x128xf32, #tpu.memory_space<any>> -> memref<128xf32, #tpu.memory_space<any>>
    %c0_i32_39 = arith.constant 0 : i32
    %87 = tpu.memref_slice %arg5[%c9_i32_36, %c0_i32_39] : memref<16x128xf32, #tpu.memory_space<vmem>> -> memref<1x128xf32, #tpu.memory_space<vmem>>
    %88 = tpu.memref_squeeze %87 : memref<1x128xf32, #tpu.memory_space<vmem>> -> memref<128xf32, #tpu.memory_space<vmem>>
    %89 = tpu.memref_slice %arg6[%c9_i32_37] : memref<16x!tpu.dma_semaphore, #tpu.memory_space<semaphore_mem>> -> memref<1x!tpu.dma_semaphore, #tpu.memory_space<semaphore_mem>>
    %90 = tpu.memref_squeeze %89 : memref<1x!tpu.dma_semaphore, #tpu.memory_space<semaphore_mem>> -> memref<!tpu.dma_semaphore, #tpu.memory_space<semaphore_mem>>
    tpu.enqueue_dma source(%86 : memref<128xf32, #tpu.memory_space<any>>) target(%88 : memref<128xf32, #tpu.memory_space<vmem>>) target_semaphore(%90 : memref<!tpu.dma_semaphore, #tpu.memory_space<semaphore_mem>>)
    %c10_i32 = arith.constant 10 : i32
    %91 = arith.addi %0, %c10_i32 : i32
    %92 = arith.index_cast %91 : i32 to index
    %93 = memref.load %arg1[%92] : memref<16xi32, #tpu.memory_space<smem>>
    %c10_i32_40 = arith.constant 10 : i32
    %c10_i32_41 = arith.constant 10 : i32
    %c0_i32_42 = arith.constant 0 : i32
    %94 = tpu.memref_slice %arg2[%93, %c0_i32_42] : memref<64x128xf32, #tpu.memory_space<any>> -> memref<1x128xf32, #tpu.memory_space<any>>
    %95 = tpu.memref_squeeze %94 : memref<1x128xf32, #tpu.memory_space<any>> -> memref<128xf32, #tpu.memory_space<any>>
    %c0_i32_43 = arith.constant 0 : i32
    %96 = tpu.memref_slice %arg5[%c10_i32_40, %c0_i32_43] : memref<16x128xf32, #tpu.memory_space<vmem>> -> memref<1x128xf32, #tpu.memory_space<vmem>>
    %97 = tpu.memref_squeeze %96 : memref<1x128xf32, #tpu.memory_space<vmem>> -> memref<128xf32, #tpu.memory_space<vmem>>
    %98 = tpu.memref_slice %arg6[%c10_i32_41] : memref<16x!tpu.dma_semaphore, #tpu.memory_space<semaphore_mem>> -> memref<1x!tpu.dma_semaphore, #tpu.memory_space<semaphore_mem>>
    %99 = tpu.memref_squeeze %98 : memref<1x!tpu.dma_semaphore, #tpu.memory_space<semaphore_mem>> -> memref<!tpu.dma_semaphore, #tpu.memory_space<semaphore_mem>>
    tpu.enqueue_dma source(%95 : memref<128xf32, #tpu.memory_space<any>>) target(%97 : memref<128xf32, #tpu.memory_space<vmem>>) target_semaphore(%99 : memref<!tpu.dma_semaphore, #tpu.memory_space<semaphore_mem>>)
    %c11_i32 = arith.constant 11 : i32
    %100 = arith.addi %0, %c11_i32 : i32
    %101 = arith.index_cast %100 : i32 to index
    %102 = memref.load %arg1[%101] : memref<16xi32, #tpu.memory_space<smem>>
    %c11_i32_44 = arith.constant 11 : i32
    %c11_i32_45 = arith.constant 11 : i32
    %c0_i32_46 = arith.constant 0 : i32
    %103 = tpu.memref_slice %arg2[%102, %c0_i32_46] : memref<64x128xf32, #tpu.memory_space<any>> -> memref<1x128xf32, #tpu.memory_space<any>>
    %104 = tpu.memref_squeeze %103 : memref<1x128xf32, #tpu.memory_space<any>> -> memref<128xf32, #tpu.memory_space<any>>
    %c0_i32_47 = arith.constant 0 : i32
    %105 = tpu.memref_slice %arg5[%c11_i32_44, %c0_i32_47] : memref<16x128xf32, #tpu.memory_space<vmem>> -> memref<1x128xf32, #tpu.memory_space<vmem>>
    %106 = tpu.memref_squeeze %105 : memref<1x128xf32, #tpu.memory_space<vmem>> -> memref<128xf32, #tpu.memory_space<vmem>>
    %107 = tpu.memref_slice %arg6[%c11_i32_45] : memref<16x!tpu.dma_semaphore, #tpu.memory_space<semaphore_mem>> -> memref<1x!tpu.dma_semaphore, #tpu.memory_space<semaphore_mem>>
    %108 = tpu.memref_squeeze %107 : memref<1x!tpu.dma_semaphore, #tpu.memory_space<semaphore_mem>> -> memref<!tpu.dma_semaphore, #tpu.memory_space<semaphore_mem>>
    tpu.enqueue_dma source(%104 : memref<128xf32, #tpu.memory_space<any>>) target(%106 : memref<128xf32, #tpu.memory_space<vmem>>) target_semaphore(%108 : memref<!tpu.dma_semaphore, #tpu.memory_space<semaphore_mem>>)
    %c12_i32 = arith.constant 12 : i32
    %109 = arith.addi %0, %c12_i32 : i32
    %110 = arith.index_cast %109 : i32 to index
    %111 = memref.load %arg1[%110] : memref<16xi32, #tpu.memory_space<smem>>
    %c12_i32_48 = arith.constant 12 : i32
    %c12_i32_49 = arith.constant 12 : i32
    %c0_i32_50 = arith.constant 0 : i32
    %112 = tpu.memref_slice %arg2[%111, %c0_i32_50] : memref<64x128xf32, #tpu.memory_space<any>> -> memref<1x128xf32, #tpu.memory_space<any>>
    %113 = tpu.memref_squeeze %112 : memref<1x128xf32, #tpu.memory_space<any>> -> memref<128xf32, #tpu.memory_space<any>>
    %c0_i32_51 = arith.constant 0 : i32
    %114 = tpu.memref_slice %arg5[%c12_i32_48, %c0_i32_51] : memref<16x128xf32, #tpu.memory_space<vmem>> -> memref<1x128xf32, #tpu.memory_space<vmem>>
    %115 = tpu.memref_squeeze %114 : memref<1x128xf32, #tpu.memory_space<vmem>> -> memref<128xf32, #tpu.memory_space<vmem>>
    %116 = tpu.memref_slice %arg6[%c12_i32_49] : memref<16x!tpu.dma_semaphore, #tpu.memory_space<semaphore_mem>> -> memref<1x!tpu.dma_semaphore, #tpu.memory_space<semaphore_mem>>
    %117 = tpu.memref_squeeze %116 : memref<1x!tpu.dma_semaphore, #tpu.memory_space<semaphore_mem>> -> memref<!tpu.dma_semaphore, #tpu.memory_space<semaphore_mem>>
    tpu.enqueue_dma source(%113 : memref<128xf32, #tpu.memory_space<any>>) target(%115 : memref<128xf32, #tpu.memory_space<vmem>>) target_semaphore(%117 : memref<!tpu.dma_semaphore, #tpu.memory_space<semaphore_mem>>)
    %c13_i32 = arith.constant 13 : i32
    %118 = arith.addi %0, %c13_i32 : i32
    %119 = arith.index_cast %118 : i32 to index
    %120 = memref.load %arg1[%119] : memref<16xi32, #tpu.memory_space<smem>>
    %c13_i32_52 = arith.constant 13 : i32
    %c13_i32_53 = arith.constant 13 : i32
    %c0_i32_54 = arith.constant 0 : i32
    %121 = tpu.memref_slice %arg2[%120, %c0_i32_54] : memref<64x128xf32, #tpu.memory_space<any>> -> memref<1x128xf32, #tpu.memory_space<any>>
    %122 = tpu.memref_squeeze %121 : memref<1x128xf32, #tpu.memory_space<any>> -> memref<128xf32, #tpu.memory_space<any>>
    %c0_i32_55 = arith.constant 0 : i32
    %123 = tpu.memref_slice %arg5[%c13_i32_52, %c0_i32_55] : memref<16x128xf32, #tpu.memory_space<vmem>> -> memref<1x128xf32, #tpu.memory_space<vmem>>
    %124 = tpu.memref_squeeze %123 : memref<1x128xf32, #tpu.memory_space<vmem>> -> memref<128xf32, #tpu.memory_space<vmem>>
    %125 = tpu.memref_slice %arg6[%c13_i32_53] : memref<16x!tpu.dma_semaphore, #tpu.memory_space<semaphore_mem>> -> memref<1x!tpu.dma_semaphore, #tpu.memory_space<semaphore_mem>>
    %126 = tpu.memref_squeeze %125 : memref<1x!tpu.dma_semaphore, #tpu.memory_space<semaphore_mem>> -> memref<!tpu.dma_semaphore, #tpu.memory_space<semaphore_mem>>
    tpu.enqueue_dma source(%122 : memref<128xf32, #tpu.memory_space<any>>) target(%124 : memref<128xf32, #tpu.memory_space<vmem>>) target_semaphore(%126 : memref<!tpu.dma_semaphore, #tpu.memory_space<semaphore_mem>>)
    %c14_i32 = arith.constant 14 : i32
    %127 = arith.addi %0, %c14_i32 : i32
    %128 = arith.index_cast %127 : i32 to index
    %129 = memref.load %arg1[%128] : memref<16xi32, #tpu.memory_space<smem>>
    %c14_i32_56 = arith.constant 14 : i32
    %c14_i32_57 = arith.constant 14 : i32
    %c0_i32_58 = arith.constant 0 : i32
    %130 = tpu.memref_slice %arg2[%129, %c0_i32_58] : memref<64x128xf32, #tpu.memory_space<any>> -> memref<1x128xf32, #tpu.memory_space<any>>
    %131 = tpu.memref_squeeze %130 : memref<1x128xf32, #tpu.memory_space<any>> -> memref<128xf32, #tpu.memory_space<any>>
    %c0_i32_59 = arith.constant 0 : i32
    %132 = tpu.memref_slice %arg5[%c14_i32_56, %c0_i32_59] : memref<16x128xf32, #tpu.memory_space<vmem>> -> memref<1x128xf32, #tpu.memory_space<vmem>>
    %133 = tpu.memref_squeeze %132 : memref<1x128xf32, #tpu.memory_space<vmem>> -> memref<128xf32, #tpu.memory_space<vmem>>
    %134 = tpu.memref_slice %arg6[%c14_i32_57] : memref<16x!tpu.dma_semaphore, #tpu.memory_space<semaphore_mem>> -> memref<1x!tpu.dma_semaphore, #tpu.memory_space<semaphore_mem>>
    %135 = tpu.memref_squeeze %134 : memref<1x!tpu.dma_semaphore, #tpu.memory_space<semaphore_mem>> -> memref<!tpu.dma_semaphore, #tpu.memory_space<semaphore_mem>>
    tpu.enqueue_dma source(%131 : memref<128xf32, #tpu.memory_space<any>>) target(%133 : memref<128xf32, #tpu.memory_space<vmem>>) target_semaphore(%135 : memref<!tpu.dma_semaphore, #tpu.memory_space<semaphore_mem>>)
    %c15_i32 = arith.constant 15 : i32
    %136 = arith.addi %0, %c15_i32 : i32
    %137 = arith.index_cast %136 : i32 to index
    %138 = memref.load %arg1[%137] : memref<16xi32, #tpu.memory_space<smem>>
    %c15_i32_60 = arith.constant 15 : i32
    %c15_i32_61 = arith.constant 15 : i32
    %c0_i32_62 = arith.constant 0 : i32
    %139 = tpu.memref_slice %arg2[%138, %c0_i32_62] : memref<64x128xf32, #tpu.memory_space<any>> -> memref<1x128xf32, #tpu.memory_space<any>>
    %140 = tpu.memref_squeeze %139 : memref<1x128xf32, #tpu.memory_space<any>> -> memref<128xf32, #tpu.memory_space<any>>
    %c0_i32_63 = arith.constant 0 : i32
    %141 = tpu.memref_slice %arg5[%c15_i32_60, %c0_i32_63] : memref<16x128xf32, #tpu.memory_space<vmem>> -> memref<1x128xf32, #tpu.memory_space<vmem>>
    %142 = tpu.memref_squeeze %141 : memref<1x128xf32, #tpu.memory_space<vmem>> -> memref<128xf32, #tpu.memory_space<vmem>>
    %143 = tpu.memref_slice %arg6[%c15_i32_61] : memref<16x!tpu.dma_semaphore, #tpu.memory_space<semaphore_mem>> -> memref<1x!tpu.dma_semaphore, #tpu.memory_space<semaphore_mem>>
    %144 = tpu.memref_squeeze %143 : memref<1x!tpu.dma_semaphore, #tpu.memory_space<semaphore_mem>> -> memref<!tpu.dma_semaphore, #tpu.memory_space<semaphore_mem>>
    tpu.enqueue_dma source(%140 : memref<128xf32, #tpu.memory_space<any>>) target(%142 : memref<128xf32, #tpu.memory_space<vmem>>) target_semaphore(%144 : memref<!tpu.dma_semaphore, #tpu.memory_space<semaphore_mem>>)
    %c0_i32_64 = arith.constant 0 : i32
    %c0_i32_65 = arith.constant 0 : i32
    %c0_i32_66 = arith.constant 0 : i32
    %c0_i32_67 = arith.constant 0 : i32
    %145 = tpu.memref_slice %arg2[%c0_i32_64, %c0_i32_67] : memref<64x128xf32, #tpu.memory_space<any>> -> memref<1x128xf32, #tpu.memory_space<any>>
    %146 = tpu.memref_squeeze %145 : memref<1x128xf32, #tpu.memory_space<any>> -> memref<128xf32, #tpu.memory_space<any>>
    %c0_i32_68 = arith.constant 0 : i32
    %147 = tpu.memref_slice %arg5[%c0_i32_65, %c0_i32_68] : memref<16x128xf32, #tpu.memory_space<vmem>> -> memref<1x128xf32, #tpu.memory_space<vmem>>
    %148 = tpu.memref_squeeze %147 : memref<1x128xf32, #tpu.memory_space<vmem>> -> memref<128xf32, #tpu.memory_space<vmem>>
    %149 = tpu.memref_slice %arg6[%c0_i32_66] : memref<16x!tpu.dma_semaphore, #tpu.memory_space<semaphore_mem>> -> memref<1x!tpu.dma_semaphore, #tpu.memory_space<semaphore_mem>>
    %150 = tpu.memref_squeeze %149 : memref<1x!tpu.dma_semaphore, #tpu.memory_space<semaphore_mem>> -> memref<!tpu.dma_semaphore, #tpu.memory_space<semaphore_mem>>
    tpu.wait_dma2 semaphore(%150 : memref<!tpu.dma_semaphore, #tpu.memory_space<semaphore_mem>>) src(%146 : memref<128xf32, #tpu.memory_space<any>>) dst(%148 : memref<128xf32, #tpu.memory_space<vmem>>)
    %c0_i32_69 = arith.constant 0 : i32
    %c1_i32_70 = arith.constant 1 : i32
    %c1_i32_71 = arith.constant 1 : i32
    %c0_i32_72 = arith.constant 0 : i32
    %151 = tpu.memref_slice %arg2[%c0_i32_69, %c0_i32_72] : memref<64x128xf32, #tpu.memory_space<any>> -> memref<1x128xf32, #tpu.memory_space<any>>
    %152 = tpu.memref_squeeze %151 : memref<1x128xf32, #tpu.memory_space<any>> -> memref<128xf32, #tpu.memory_space<any>>
    %c0_i32_73 = arith.constant 0 : i32
    %153 = tpu.memref_slice %arg5[%c1_i32_70, %c0_i32_73] : memref<16x128xf32, #tpu.memory_space<vmem>> -> memref<1x128xf32, #tpu.memory_space<vmem>>
    %154 = tpu.memref_squeeze %153 : memref<1x128xf32, #tpu.memory_space<vmem>> -> memref<128xf32, #tpu.memory_space<vmem>>
    %155 = tpu.memref_slice %arg6[%c1_i32_71] : memref<16x!tpu.dma_semaphore, #tpu.memory_space<semaphore_mem>> -> memref<1x!tpu.dma_semaphore, #tpu.memory_space<semaphore_mem>>
    %156 = tpu.memref_squeeze %155 : memref<1x!tpu.dma_semaphore, #tpu.memory_space<semaphore_mem>> -> memref<!tpu.dma_semaphore, #tpu.memory_space<semaphore_mem>>
    tpu.wait_dma2 semaphore(%156 : memref<!tpu.dma_semaphore, #tpu.memory_space<semaphore_mem>>) src(%152 : memref<128xf32, #tpu.memory_space<any>>) dst(%154 : memref<128xf32, #tpu.memory_space<vmem>>)
    %c0_i32_74 = arith.constant 0 : i32
    %c2_i32_75 = arith.constant 2 : i32
    %c2_i32_76 = arith.constant 2 : i32
    %c0_i32_77 = arith.constant 0 : i32
    %157 = tpu.memref_slice %arg2[%c0_i32_74, %c0_i32_77] : memref<64x128xf32, #tpu.memory_space<any>> -> memref<1x128xf32, #tpu.memory_space<any>>
    %158 = tpu.memref_squeeze %157 : memref<1x128xf32, #tpu.memory_space<any>> -> memref<128xf32, #tpu.memory_space<any>>
    %c0_i32_78 = arith.constant 0 : i32
    %159 = tpu.memref_slice %arg5[%c2_i32_75, %c0_i32_78] : memref<16x128xf32, #tpu.memory_space<vmem>> -> memref<1x128xf32, #tpu.memory_space<vmem>>
    %160 = tpu.memref_squeeze %159 : memref<1x128xf32, #tpu.memory_space<vmem>> -> memref<128xf32, #tpu.memory_space<vmem>>
    %161 = tpu.memref_slice %arg6[%c2_i32_76] : memref<16x!tpu.dma_semaphore, #tpu.memory_space<semaphore_mem>> -> memref<1x!tpu.dma_semaphore, #tpu.memory_space<semaphore_mem>>
    %162 = tpu.memref_squeeze %161 : memref<1x!tpu.dma_semaphore, #tpu.memory_space<semaphore_mem>> -> memref<!tpu.dma_semaphore, #tpu.memory_space<semaphore_mem>>
    tpu.wait_dma2 semaphore(%162 : memref<!tpu.dma_semaphore, #tpu.memory_space<semaphore_mem>>) src(%158 : memref<128xf32, #tpu.memory_space<any>>) dst(%160 : memref<128xf32, #tpu.memory_space<vmem>>)
    %c0_i32_79 = arith.constant 0 : i32
    %c3_i32_80 = arith.constant 3 : i32
    %c3_i32_81 = arith.constant 3 : i32
    %c0_i32_82 = arith.constant 0 : i32
    %163 = tpu.memref_slice %arg2[%c0_i32_79, %c0_i32_82] : memref<64x128xf32, #tpu.memory_space<any>> -> memref<1x128xf32, #tpu.memory_space<any>>
    %164 = tpu.memref_squeeze %163 : memref<1x128xf32, #tpu.memory_space<any>> -> memref<128xf32, #tpu.memory_space<any>>
    %c0_i32_83 = arith.constant 0 : i32
    %165 = tpu.memref_slice %arg5[%c3_i32_80, %c0_i32_83] : memref<16x128xf32, #tpu.memory_space<vmem>> -> memref<1x128xf32, #tpu.memory_space<vmem>>
    %166 = tpu.memref_squeeze %165 : memref<1x128xf32, #tpu.memory_space<vmem>> -> memref<128xf32, #tpu.memory_space<vmem>>
    %167 = tpu.memref_slice %arg6[%c3_i32_81] : memref<16x!tpu.dma_semaphore, #tpu.memory_space<semaphore_mem>> -> memref<1x!tpu.dma_semaphore, #tpu.memory_space<semaphore_mem>>
    %168 = tpu.memref_squeeze %167 : memref<1x!tpu.dma_semaphore, #tpu.memory_space<semaphore_mem>> -> memref<!tpu.dma_semaphore, #tpu.memory_space<semaphore_mem>>
    tpu.wait_dma2 semaphore(%168 : memref<!tpu.dma_semaphore, #tpu.memory_space<semaphore_mem>>) src(%164 : memref<128xf32, #tpu.memory_space<any>>) dst(%166 : memref<128xf32, #tpu.memory_space<vmem>>)
    %c0_i32_84 = arith.constant 0 : i32
    %c4_i32_85 = arith.constant 4 : i32
    %c4_i32_86 = arith.constant 4 : i32
    %c0_i32_87 = arith.constant 0 : i32
    %169 = tpu.memref_slice %arg2[%c0_i32_84, %c0_i32_87] : memref<64x128xf32, #tpu.memory_space<any>> -> memref<1x128xf32, #tpu.memory_space<any>>
    %170 = tpu.memref_squeeze %169 : memref<1x128xf32, #tpu.memory_space<any>> -> memref<128xf32, #tpu.memory_space<any>>
    %c0_i32_88 = arith.constant 0 : i32
    %171 = tpu.memref_slice %arg5[%c4_i32_85, %c0_i32_88] : memref<16x128xf32, #tpu.memory_space<vmem>> -> memref<1x128xf32, #tpu.memory_space<vmem>>
    %172 = tpu.memref_squeeze %171 : memref<1x128xf32, #tpu.memory_space<vmem>> -> memref<128xf32, #tpu.memory_space<vmem>>
    %173 = tpu.memref_slice %arg6[%c4_i32_86] : memref<16x!tpu.dma_semaphore, #tpu.memory_space<semaphore_mem>> -> memref<1x!tpu.dma_semaphore, #tpu.memory_space<semaphore_mem>>
    %174 = tpu.memref_squeeze %173 : memref<1x!tpu.dma_semaphore, #tpu.memory_space<semaphore_mem>> -> memref<!tpu.dma_semaphore, #tpu.memory_space<semaphore_mem>>
    tpu.wait_dma2 semaphore(%174 : memref<!tpu.dma_semaphore, #tpu.memory_space<semaphore_mem>>) src(%170 : memref<128xf32, #tpu.memory_space<any>>) dst(%172 : memref<128xf32, #tpu.memory_space<vmem>>)
    %c0_i32_89 = arith.constant 0 : i32
    %c5_i32_90 = arith.constant 5 : i32
    %c5_i32_91 = arith.constant 5 : i32
    %c0_i32_92 = arith.constant 0 : i32
    %175 = tpu.memref_slice %arg2[%c0_i32_89, %c0_i32_92] : memref<64x128xf32, #tpu.memory_space<any>> -> memref<1x128xf32, #tpu.memory_space<any>>
    %176 = tpu.memref_squeeze %175 : memref<1x128xf32, #tpu.memory_space<any>> -> memref<128xf32, #tpu.memory_space<any>>
    %c0_i32_93 = arith.constant 0 : i32
    %177 = tpu.memref_slice %arg5[%c5_i32_90, %c0_i32_93] : memref<16x128xf32, #tpu.memory_space<vmem>> -> memref<1x128xf32, #tpu.memory_space<vmem>>
    %178 = tpu.memref_squeeze %177 : memref<1x128xf32, #tpu.memory_space<vmem>> -> memref<128xf32, #tpu.memory_space<vmem>>
    %179 = tpu.memref_slice %arg6[%c5_i32_91] : memref<16x!tpu.dma_semaphore, #tpu.memory_space<semaphore_mem>> -> memref<1x!tpu.dma_semaphore, #tpu.memory_space<semaphore_mem>>
    %180 = tpu.memref_squeeze %179 : memref<1x!tpu.dma_semaphore, #tpu.memory_space<semaphore_mem>> -> memref<!tpu.dma_semaphore, #tpu.memory_space<semaphore_mem>>
    tpu.wait_dma2 semaphore(%180 : memref<!tpu.dma_semaphore, #tpu.memory_space<semaphore_mem>>) src(%176 : memref<128xf32, #tpu.memory_space<any>>) dst(%178 : memref<128xf32, #tpu.memory_space<vmem>>)
    %c0_i32_94 = arith.constant 0 : i32
    %c6_i32_95 = arith.constant 6 : i32
    %c6_i32_96 = arith.constant 6 : i32
    %c0_i32_97 = arith.constant 0 : i32
    %181 = tpu.memref_slice %arg2[%c0_i32_94, %c0_i32_97] : memref<64x128xf32, #tpu.memory_space<any>> -> memref<1x128xf32, #tpu.memory_space<any>>
    %182 = tpu.memref_squeeze %181 : memref<1x128xf32, #tpu.memory_space<any>> -> memref<128xf32, #tpu.memory_space<any>>
    %c0_i32_98 = arith.constant 0 : i32
    %183 = tpu.memref_slice %arg5[%c6_i32_95, %c0_i32_98] : memref<16x128xf32, #tpu.memory_space<vmem>> -> memref<1x128xf32, #tpu.memory_space<vmem>>
    %184 = tpu.memref_squeeze %183 : memref<1x128xf32, #tpu.memory_space<vmem>> -> memref<128xf32, #tpu.memory_space<vmem>>
    %185 = tpu.memref_slice %arg6[%c6_i32_96] : memref<16x!tpu.dma_semaphore, #tpu.memory_space<semaphore_mem>> -> memref<1x!tpu.dma_semaphore, #tpu.memory_space<semaphore_mem>>
    %186 = tpu.memref_squeeze %185 : memref<1x!tpu.dma_semaphore, #tpu.memory_space<semaphore_mem>> -> memref<!tpu.dma_semaphore, #tpu.memory_space<semaphore_mem>>
    tpu.wait_dma2 semaphore(%186 : memref<!tpu.dma_semaphore, #tpu.memory_space<semaphore_mem>>) src(%182 : memref<128xf32, #tpu.memory_space<any>>) dst(%184 : memref<128xf32, #tpu.memory_space<vmem>>)
    %c0_i32_99 = arith.constant 0 : i32
    %c7_i32_100 = arith.constant 7 : i32
    %c7_i32_101 = arith.constant 7 : i32
    %c0_i32_102 = arith.constant 0 : i32
    %187 = tpu.memref_slice %arg2[%c0_i32_99, %c0_i32_102] : memref<64x128xf32, #tpu.memory_space<any>> -> memref<1x128xf32, #tpu.memory_space<any>>
    %188 = tpu.memref_squeeze %187 : memref<1x128xf32, #tpu.memory_space<any>> -> memref<128xf32, #tpu.memory_space<any>>
    %c0_i32_103 = arith.constant 0 : i32
    %189 = tpu.memref_slice %arg5[%c7_i32_100, %c0_i32_103] : memref<16x128xf32, #tpu.memory_space<vmem>> -> memref<1x128xf32, #tpu.memory_space<vmem>>
    %190 = tpu.memref_squeeze %189 : memref<1x128xf32, #tpu.memory_space<vmem>> -> memref<128xf32, #tpu.memory_space<vmem>>
    %191 = tpu.memref_slice %arg6[%c7_i32_101] : memref<16x!tpu.dma_semaphore, #tpu.memory_space<semaphore_mem>> -> memref<1x!tpu.dma_semaphore, #tpu.memory_space<semaphore_mem>>
    %192 = tpu.memref_squeeze %191 : memref<1x!tpu.dma_semaphore, #tpu.memory_space<semaphore_mem>> -> memref<!tpu.dma_semaphore, #tpu.memory_space<semaphore_mem>>
    tpu.wait_dma2 semaphore(%192 : memref<!tpu.dma_semaphore, #tpu.memory_space<semaphore_mem>>) src(%188 : memref<128xf32, #tpu.memory_space<any>>) dst(%190 : memref<128xf32, #tpu.memory_space<vmem>>)
    %c0_i32_104 = arith.constant 0 : i32
    %c8_i32_105 = arith.constant 8 : i32
    %c8_i32_106 = arith.constant 8 : i32
    %c0_i32_107 = arith.constant 0 : i32
    %193 = tpu.memref_slice %arg2[%c0_i32_104, %c0_i32_107] : memref<64x128xf32, #tpu.memory_space<any>> -> memref<1x128xf32, #tpu.memory_space<any>>
    %194 = tpu.memref_squeeze %193 : memref<1x128xf32, #tpu.memory_space<any>> -> memref<128xf32, #tpu.memory_space<any>>
    %c0_i32_108 = arith.constant 0 : i32
    %195 = tpu.memref_slice %arg5[%c8_i32_105, %c0_i32_108] : memref<16x128xf32, #tpu.memory_space<vmem>> -> memref<1x128xf32, #tpu.memory_space<vmem>>
    %196 = tpu.memref_squeeze %195 : memref<1x128xf32, #tpu.memory_space<vmem>> -> memref<128xf32, #tpu.memory_space<vmem>>
    %197 = tpu.memref_slice %arg6[%c8_i32_106] : memref<16x!tpu.dma_semaphore, #tpu.memory_space<semaphore_mem>> -> memref<1x!tpu.dma_semaphore, #tpu.memory_space<semaphore_mem>>
    %198 = tpu.memref_squeeze %197 : memref<1x!tpu.dma_semaphore, #tpu.memory_space<semaphore_mem>> -> memref<!tpu.dma_semaphore, #tpu.memory_space<semaphore_mem>>
    tpu.wait_dma2 semaphore(%198 : memref<!tpu.dma_semaphore, #tpu.memory_space<semaphore_mem>>) src(%194 : memref<128xf32, #tpu.memory_space<any>>) dst(%196 : memref<128xf32, #tpu.memory_space<vmem>>)
    %c0_i32_109 = arith.constant 0 : i32
    %c9_i32_110 = arith.constant 9 : i32
    %c9_i32_111 = arith.constant 9 : i32
    %c0_i32_112 = arith.constant 0 : i32
    %199 = tpu.memref_slice %arg2[%c0_i32_109, %c0_i32_112] : memref<64x128xf32, #tpu.memory_space<any>> -> memref<1x128xf32, #tpu.memory_space<any>>
    %200 = tpu.memref_squeeze %199 : memref<1x128xf32, #tpu.memory_space<any>> -> memref<128xf32, #tpu.memory_space<any>>
    %c0_i32_113 = arith.constant 0 : i32
    %201 = tpu.memref_slice %arg5[%c9_i32_110, %c0_i32_113] : memref<16x128xf32, #tpu.memory_space<vmem>> -> memref<1x128xf32, #tpu.memory_space<vmem>>
    %202 = tpu.memref_squeeze %201 : memref<1x128xf32, #tpu.memory_space<vmem>> -> memref<128xf32, #tpu.memory_space<vmem>>
    %203 = tpu.memref_slice %arg6[%c9_i32_111] : memref<16x!tpu.dma_semaphore, #tpu.memory_space<semaphore_mem>> -> memref<1x!tpu.dma_semaphore, #tpu.memory_space<semaphore_mem>>
    %204 = tpu.memref_squeeze %203 : memref<1x!tpu.dma_semaphore, #tpu.memory_space<semaphore_mem>> -> memref<!tpu.dma_semaphore, #tpu.memory_space<semaphore_mem>>
    tpu.wait_dma2 semaphore(%204 : memref<!tpu.dma_semaphore, #tpu.memory_space<semaphore_mem>>) src(%200 : memref<128xf32, #tpu.memory_space<any>>) dst(%202 : memref<128xf32, #tpu.memory_space<vmem>>)
    %c0_i32_114 = arith.constant 0 : i32
    %c10_i32_115 = arith.constant 10 : i32
    %c10_i32_116 = arith.constant 10 : i32
    %c0_i32_117 = arith.constant 0 : i32
    %205 = tpu.memref_slice %arg2[%c0_i32_114, %c0_i32_117] : memref<64x128xf32, #tpu.memory_space<any>> -> memref<1x128xf32, #tpu.memory_space<any>>
    %206 = tpu.memref_squeeze %205 : memref<1x128xf32, #tpu.memory_space<any>> -> memref<128xf32, #tpu.memory_space<any>>
    %c0_i32_118 = arith.constant 0 : i32
    %207 = tpu.memref_slice %arg5[%c10_i32_115, %c0_i32_118] : memref<16x128xf32, #tpu.memory_space<vmem>> -> memref<1x128xf32, #tpu.memory_space<vmem>>
    %208 = tpu.memref_squeeze %207 : memref<1x128xf32, #tpu.memory_space<vmem>> -> memref<128xf32, #tpu.memory_space<vmem>>
    %209 = tpu.memref_slice %arg6[%c10_i32_116] : memref<16x!tpu.dma_semaphore, #tpu.memory_space<semaphore_mem>> -> memref<1x!tpu.dma_semaphore, #tpu.memory_space<semaphore_mem>>
    %210 = tpu.memref_squeeze %209 : memref<1x!tpu.dma_semaphore, #tpu.memory_space<semaphore_mem>> -> memref<!tpu.dma_semaphore, #tpu.memory_space<semaphore_mem>>
    tpu.wait_dma2 semaphore(%210 : memref<!tpu.dma_semaphore, #tpu.memory_space<semaphore_mem>>) src(%206 : memref<128xf32, #tpu.memory_space<any>>) dst(%208 : memref<128xf32, #tpu.memory_space<vmem>>)
    %c0_i32_119 = arith.constant 0 : i32
    %c11_i32_120 = arith.constant 11 : i32
    %c11_i32_121 = arith.constant 11 : i32
    %c0_i32_122 = arith.constant 0 : i32
    %211 = tpu.memref_slice %arg2[%c0_i32_119, %c0_i32_122] : memref<64x128xf32, #tpu.memory_space<any>> -> memref<1x128xf32, #tpu.memory_space<any>>
    %212 = tpu.memref_squeeze %211 : memref<1x128xf32, #tpu.memory_space<any>> -> memref<128xf32, #tpu.memory_space<any>>
    %c0_i32_123 = arith.constant 0 : i32
    %213 = tpu.memref_slice %arg5[%c11_i32_120, %c0_i32_123] : memref<16x128xf32, #tpu.memory_space<vmem>> -> memref<1x128xf32, #tpu.memory_space<vmem>>
    %214 = tpu.memref_squeeze %213 : memref<1x128xf32, #tpu.memory_space<vmem>> -> memref<128xf32, #tpu.memory_space<vmem>>
    %215 = tpu.memref_slice %arg6[%c11_i32_121] : memref<16x!tpu.dma_semaphore, #tpu.memory_space<semaphore_mem>> -> memref<1x!tpu.dma_semaphore, #tpu.memory_space<semaphore_mem>>
    %216 = tpu.memref_squeeze %215 : memref<1x!tpu.dma_semaphore, #tpu.memory_space<semaphore_mem>> -> memref<!tpu.dma_semaphore, #tpu.memory_space<semaphore_mem>>
    tpu.wait_dma2 semaphore(%216 : memref<!tpu.dma_semaphore, #tpu.memory_space<semaphore_mem>>) src(%212 : memref<128xf32, #tpu.memory_space<any>>) dst(%214 : memref<128xf32, #tpu.memory_space<vmem>>)
    %c0_i32_124 = arith.constant 0 : i32
    %c12_i32_125 = arith.constant 12 : i32
    %c12_i32_126 = arith.constant 12 : i32
    %c0_i32_127 = arith.constant 0 : i32
    %217 = tpu.memref_slice %arg2[%c0_i32_124, %c0_i32_127] : memref<64x128xf32, #tpu.memory_space<any>> -> memref<1x128xf32, #tpu.memory_space<any>>
    %218 = tpu.memref_squeeze %217 : memref<1x128xf32, #tpu.memory_space<any>> -> memref<128xf32, #tpu.memory_space<any>>
    %c0_i32_128 = arith.constant 0 : i32
    %219 = tpu.memref_slice %arg5[%c12_i32_125, %c0_i32_128] : memref<16x128xf32, #tpu.memory_space<vmem>> -> memref<1x128xf32, #tpu.memory_space<vmem>>
    %220 = tpu.memref_squeeze %219 : memref<1x128xf32, #tpu.memory_space<vmem>> -> memref<128xf32, #tpu.memory_space<vmem>>
    %221 = tpu.memref_slice %arg6[%c12_i32_126] : memref<16x!tpu.dma_semaphore, #tpu.memory_space<semaphore_mem>> -> memref<1x!tpu.dma_semaphore, #tpu.memory_space<semaphore_mem>>
    %222 = tpu.memref_squeeze %221 : memref<1x!tpu.dma_semaphore, #tpu.memory_space<semaphore_mem>> -> memref<!tpu.dma_semaphore, #tpu.memory_space<semaphore_mem>>
    tpu.wait_dma2 semaphore(%222 : memref<!tpu.dma_semaphore, #tpu.memory_space<semaphore_mem>>) src(%218 : memref<128xf32, #tpu.memory_space<any>>) dst(%220 : memref<128xf32, #tpu.memory_space<vmem>>)
    %c0_i32_129 = arith.constant 0 : i32
    %c13_i32_130 = arith.constant 13 : i32
    %c13_i32_131 = arith.constant 13 : i32
    %c0_i32_132 = arith.constant 0 : i32
    %223 = tpu.memref_slice %arg2[%c0_i32_129, %c0_i32_132] : memref<64x128xf32, #tpu.memory_space<any>> -> memref<1x128xf32, #tpu.memory_space<any>>
    %224 = tpu.memref_squeeze %223 : memref<1x128xf32, #tpu.memory_space<any>> -> memref<128xf32, #tpu.memory_space<any>>
    %c0_i32_133 = arith.constant 0 : i32
    %225 = tpu.memref_slice %arg5[%c13_i32_130, %c0_i32_133] : memref<16x128xf32, #tpu.memory_space<vmem>> -> memref<1x128xf32, #tpu.memory_space<vmem>>
    %226 = tpu.memref_squeeze %225 : memref<1x128xf32, #tpu.memory_space<vmem>> -> memref<128xf32, #tpu.memory_space<vmem>>
    %227 = tpu.memref_slice %arg6[%c13_i32_131] : memref<16x!tpu.dma_semaphore, #tpu.memory_space<semaphore_mem>> -> memref<1x!tpu.dma_semaphore, #tpu.memory_space<semaphore_mem>>
    %228 = tpu.memref_squeeze %227 : memref<1x!tpu.dma_semaphore, #tpu.memory_space<semaphore_mem>> -> memref<!tpu.dma_semaphore, #tpu.memory_space<semaphore_mem>>
    tpu.wait_dma2 semaphore(%228 : memref<!tpu.dma_semaphore, #tpu.memory_space<semaphore_mem>>) src(%224 : memref<128xf32, #tpu.memory_space<any>>) dst(%226 : memref<128xf32, #tpu.memory_space<vmem>>)
    %c0_i32_134 = arith.constant 0 : i32
    %c14_i32_135 = arith.constant 14 : i32
    %c14_i32_136 = arith.constant 14 : i32
    %c0_i32_137 = arith.constant 0 : i32
    %229 = tpu.memref_slice %arg2[%c0_i32_134, %c0_i32_137] : memref<64x128xf32, #tpu.memory_space<any>> -> memref<1x128xf32, #tpu.memory_space<any>>
    %230 = tpu.memref_squeeze %229 : memref<1x128xf32, #tpu.memory_space<any>> -> memref<128xf32, #tpu.memory_space<any>>
    %c0_i32_138 = arith.constant 0 : i32
    %231 = tpu.memref_slice %arg5[%c14_i32_135, %c0_i32_138] : memref<16x128xf32, #tpu.memory_space<vmem>> -> memref<1x128xf32, #tpu.memory_space<vmem>>
    %232 = tpu.memref_squeeze %231 : memref<1x128xf32, #tpu.memory_space<vmem>> -> memref<128xf32, #tpu.memory_space<vmem>>
    %233 = tpu.memref_slice %arg6[%c14_i32_136] : memref<16x!tpu.dma_semaphore, #tpu.memory_space<semaphore_mem>> -> memref<1x!tpu.dma_semaphore, #tpu.memory_space<semaphore_mem>>
    %234 = tpu.memref_squeeze %233 : memref<1x!tpu.dma_semaphore, #tpu.memory_space<semaphore_mem>> -> memref<!tpu.dma_semaphore, #tpu.memory_space<semaphore_mem>>
    tpu.wait_dma2 semaphore(%234 : memref<!tpu.dma_semaphore, #tpu.memory_space<semaphore_mem>>) src(%230 : memref<128xf32, #tpu.memory_space<any>>) dst(%232 : memref<128xf32, #tpu.memory_space<vmem>>)
    %c0_i32_139 = arith.constant 0 : i32
    %c15_i32_140 = arith.constant 15 : i32
    %c15_i32_141 = arith.constant 15 : i32
    %c0_i32_142 = arith.constant 0 : i32
    %235 = tpu.memref_slice %arg2[%c0_i32_139, %c0_i32_142] : memref<64x128xf32, #tpu.memory_space<any>> -> memref<1x128xf32, #tpu.memory_space<any>>
    %236 = tpu.memref_squeeze %235 : memref<1x128xf32, #tpu.memory_space<any>> -> memref<128xf32, #tpu.memory_space<any>>
    %c0_i32_143 = arith.constant 0 : i32
    %237 = tpu.memref_slice %arg5[%c15_i32_140, %c0_i32_143] : memref<16x128xf32, #tpu.memory_space<vmem>> -> memref<1x128xf32, #tpu.memory_space<vmem>>
    %238 = tpu.memref_squeeze %237 : memref<1x128xf32, #tpu.memory_space<vmem>> -> memref<128xf32, #tpu.memory_space<vmem>>
    %239 = tpu.memref_slice %arg6[%c15_i32_141] : memref<16x!tpu.dma_semaphore, #tpu.memory_space<semaphore_mem>> -> memref<1x!tpu.dma_semaphore, #tpu.memory_space<semaphore_mem>>
    %240 = tpu.memref_squeeze %239 : memref<1x!tpu.dma_semaphore, #tpu.memory_space<semaphore_mem>> -> memref<!tpu.dma_semaphore, #tpu.memory_space<semaphore_mem>>
    tpu.wait_dma2 semaphore(%240 : memref<!tpu.dma_semaphore, #tpu.memory_space<semaphore_mem>>) src(%236 : memref<128xf32, #tpu.memory_space<any>>) dst(%238 : memref<128xf32, #tpu.memory_space<vmem>>)
    %c0 = arith.constant 0 : index
    %c0_144 = arith.constant 0 : index
    %241 = vector.load %arg5[%c0, %c0_144] : memref<16x128xf32, #tpu.memory_space<vmem>>, vector<16x128xf32>
    %c0_145 = arith.constant 0 : index
    %c0_146 = arith.constant 0 : index
    %242 = vector.load %arg3[%c0_145, %c0_146] : memref<1x128xf32, #tpu.memory_space<vmem>>, vector<1x128xf32>
    %243 = vector.broadcast %242 : vector<1x128xf32> to vector<16x128xf32>
    %244 = arith.addf %241, %243 : vector<16x128xf32>
    %c0_147 = arith.constant 0 : index
    %c0_148 = arith.constant 0 : index
    %245 = vector.load %arg4[%c0_147, %c0_148] : memref<16x128xf32, #tpu.memory_space<vmem>>, vector<16x128xf32>
    tpu.vector_store %arg4[%c0_147, %c0_148], %244 {strides = array<i32>} : memref<16x128xf32, #tpu.memory_space<vmem>>, vector<16x128xf32>,
    return
  }
  func.func @transform_1(%arg0: i32, %arg1: memref<16xi32, #tpu.memory_space<smem>>) -> (i32, i32) {
    %c0_i32 = arith.constant 0 : i32
    %c0_i32_0 = arith.constant 0 : i32
    %c0_i32_1 = arith.constant 0 : i32
    return %c0_i32, %c0_i32_0 : i32, i32
  }
  func.func @transform_2(%arg0: i32, %arg1: memref<16xi32, #tpu.memory_space<smem>>) -> (i32, i32) {
    %c0_i32 = arith.constant 0 : i32
    %c0_i32_0 = arith.constant 0 : i32
    return %arg0, %c0_i32 : i32, i32
  }
}

</mosaic_0001>

<bundles_post_ra>
// kernel: tpu_custom_call.1
= control target key start
LH: loop header
LB: loop body
LE: loop exit
PB: predicated region body
PF: predicated region fallthrough
CT: control target
= control target key end

     0   :  { %s1339_s0 = inlined_call_operand.hbm [shape: s32[16], index: 0, kind: input, shape index: {}]   ;;  %s1340_s1 = inlined_call_operand.hbm [shape: f32[64,128], index: 1, kind: input, shape index: {}]   ;;  %s1341_s2 = inlined_call_operand.vmem [shape: f32[1,128], index: 2, kind: input, shape index: {}]   ;;  %s1342_s3 = inlined_call_operand.hbm [shape: f32[16,128], index: 3, kind: output, shape index: {}]  }
   0x1   :  { %s557_s14 = scalar_lea.hbm %s1339_s0, 16 }
   0x2   :  { %p558_p0 = scmp.ne.s32.totalorder %s1339_s0, %s557_s14  ;;  %p561_p1 = scmp.lt.u32.totalorder %s557_s14, %s1339_s0 }
   0x4   :  { %p563_p2 = pnand %p561_p1, %p558_p0 }
   0x6   :  { %566 = shalt.err (!%p563_p2)  }
   0x7   :  { %s1009_s19 = smov [#allocation5]  }
   0x8   :  { %9 = dma.hbm_to_smem %s1339_s0, 16, %s1009_s19, [#allocation4] }
   0x9   :  { %973 = dma.done.wait [#allocation4], 16 }
   0xa   :  { %974 = vsyncadd [#allocation4], 4294967280 }
   0xb   :  { %11 = sfence }
   0xc   :  { %12 = vsyncpa [#allocation7], 0  ;;  %s16_s22 = sld [smem:[#allocation5]]  ;;  %s1010_s23 = smov [#allocation2]  }
   0xd   :  { %s26_s24 = sshll.u32 %s1010_s23, 4  ;;  %s1061_s25 = sld [smem:[#allocation5 + $0x1]]  ;;  %s1063_s24 = int_to_ptr.vmem [resolvable:$true] %s26_s24 }
   0xe   :  { %s1011_s26 = smov [#allocation2 + $0x1]   ;;  %s1065_s28 = sld [smem:[#allocation5 + $0x2]] }
   0xf   :  { %s43_s27 = sshll.u32 %s1011_s26, 4  ;;  %s1012_s29 = smov [#allocation2 + $0x2]   ;;  %s1067_s27 = int_to_ptr.vmem [resolvable:$true] %s43_s27 }
  0x10   :  { %s60_s0 = sshll.u32 %s1012_s29, 4  ;;  %s1069_s30 = sld [smem:[#allocation5 + $0x3]]  ;;  %s1071_s0 = int_to_ptr.vmem [resolvable:$true] %s60_s0 }
  0x11   :  { %s1080_s12 = scalar_lea.hbm %s1340_s1, 1024 }
  0x12   :  { %s489_s4 = sshll.u32 %s16_s22, 4 }
  0x13   :  { %s18_s7 = scalar_lea.hbm %s1340_s1, %s489_s4  ;;  %s491_s8 = sshll.u32 %s1061_s25, 4 }
  0x14   :  { %s567_s9 = scalar_lea.hbm %s18_s7, 16  ;;  %p570_p4 = scmp.lt.u32.totalorder %s18_s7, %s1340_s1 }
  0x15   :  { %p568_p3 = scmp.ne.s32.totalorder %s18_s7, %s567_s9  ;;  %p571_p5 = scmp.lt.u32.totalorder %s1080_s12, %s567_s9 }
  0x16   :  { %p573_p7 = scmp.lt.u32.totalorder %s567_s9, %s18_s7 }
  0x17   :  { %p572_p6 = por %p571_p5, %p570_p4 }
  0x19   :  { %p574_p8 = por %p573_p7, %p572_p6 }
  0x1b   :  { %p575_p9 = pnand %p574_p8, %p568_p3 }
  0x1d   :  { %578 = shalt.err (!%p575_p9)  }
  0x1e   :  { %s579_s15 = scalar_lea.vmem %s1063_s24, 16  ;;  %s1089_s16 = scalar_lea.vmem %s1063_s24, 256 }
  0x1f   :  { %p580_p10 = scmp.ne.s32.totalorder %s1063_s24, %s579_s15  ;;  %p584_p11 = scmp.lt.s32.totalorder %s1063_s24, %s1063_s24 }
  0x20   :  { %p585_p12 = scmp.lt.s32.totalorder %s1089_s16, %s579_s15 }
  0x22   :  { %p586_p13 = por %p585_p12, %p584_p11 }
  0x24   :  { %p587_p0 = pnand %p586_p13, %p580_p10 }
  0x26   :  { %590 = shalt.err (!%p587_p0)  }
  0x27   :  { %29 = dma.hbm_to_vmem [thread:$0]  %s18_s7, 16, %s1063_s24, [#allocation3] }
  0x28   :  { %s33_s19 = scalar_lea.hbm %s1340_s1, %s491_s8  ;;  %s493_s20 = sshll.u32 %s1065_s28, 4 }
  0x29   :  { %s591_s21 = scalar_lea.hbm %s33_s19, 16  ;;  %p594_p2 = scmp.lt.u32.totalorder %s33_s19, %s1340_s1 }
  0x2a   :  { %p592_p1 = scmp.ne.s32.totalorder %s33_s19, %s591_s21  ;;  %p595_p3 = scmp.lt.u32.totalorder %s1080_s12, %s591_s21 }
  0x2b   :  { %p597_p5 = scmp.lt.u32.totalorder %s591_s21, %s33_s19 }
  0x2c   :  { %p596_p4 = por %p595_p3, %p594_p2 }
  0x2e   :  { %p598_p6 = por %p597_p5, %p596_p4 }
  0x30   :  { %p599_p7 = pnand %p598_p6, %p592_p1 }
  0x32   :  { %602 = shalt.err (!%p599_p7)  }
  0x33   :  { %s603_s25 = scalar_lea.vmem %s1067_s27, 16  ;;  %p608_p9 = scmp.lt.s32.totalorder %s1067_s27, %s1063_s24 }
  0x34   :  { %p604_p8 = scmp.ne.s32.totalorder %s1067_s27, %s603_s25  ;;  %p609_p10 = scmp.lt.s32.totalorder %s1089_s16, %s603_s25 }
  0x36   :  { %p610_p11 = por %p609_p10, %p608_p9 }
  0x38   :  { %p611_p12 = pnand %p610_p11, %p604_p8 }
  0x3a   :  { %614 = shalt.err (!%p611_p12)  }
  0x3b   :  { %46 = dma.hbm_to_vmem [thread:$0]  %s33_s19, 16, %s1067_s27, [#allocation3 + $0x1] }
  0x3c   :  { %s50_s29 = scalar_lea.hbm %s1340_s1, %s493_s20  ;;  %s495_s4 = sshll.u32 %s1069_s30, 4 }
  0x3d   :  { %s615_s5 = scalar_lea.hbm %s50_s29, 16  ;;  %p618_p0 = scmp.lt.u32.totalorder %s50_s29, %s1340_s1 }
  0x3e   :  { %p616_p13 = scmp.ne.s32.totalorder %s50_s29, %s615_s5  ;;  %p619_p1 = scmp.lt.u32.totalorder %s1080_s12, %s615_s5 }
  0x3f   :  { %p621_p3 = scmp.lt.u32.totalorder %s615_s5, %s50_s29 }
  0x40   :  { %p620_p2 = por %p619_p1, %p618_p0 }
  0x42   :  { %p622_p4 = por %p621_p3, %p620_p2 }
  0x44   :  { %p623_p5 = pnand %p622_p4, %p616_p13 }
  0x46   :  { %626 = shalt.err (!%p623_p5)  }
  0x47   :  { %s627_s27 = scalar_lea.vmem %s1071_s0, 16  ;;  %p632_p7 = scmp.lt.s32.totalorder %s1071_s0, %s1063_s24 }
  0x48   :  { %p628_p6 = scmp.ne.s32.totalorder %s1071_s0, %s627_s27  ;;  %p633_p8 = scmp.lt.s32.totalorder %s1089_s16, %s627_s27 }
  0x4a   :  { %p634_p9 = por %p633_p8, %p632_p7 }
  0x4c   :  { %p635_p10 = pnand %p634_p9, %p628_p6 }
  0x4e   :  { %638 = shalt.err (!%p635_p10)  }
  0x4f   :  { %63 = dma.hbm_to_vmem [thread:$0]  %s50_s29, 16, %s1071_s0, [#allocation3 + $0x2] }
  0x50   :  { %s67_s9 = scalar_lea.hbm %s1340_s1, %s495_s4  ;;  %s1013_s10 = smov [#allocation2 + $0x3]  }
  0x51   :  { %s77_s11 = sshll.u32 %s1013_s10, 4  ;;  %s1126_s13 = sld [smem:[#allocation5 + $0x4]]  ;;  %s78_s11 = int_to_ptr.vmem [resolvable:$true] %s77_s11 }
  0x52   :  { %s639_s14 = scalar_lea.hbm %s67_s9, 16  ;;  %p642_p12 = scmp.lt.u32.totalorder %s67_s9, %s1340_s1 }
  0x53   :  { %p640_p11 = scmp.ne.s32.totalorder %s67_s9, %s639_s14  ;;  %p643_p13 = scmp.lt.u32.totalorder %s1080_s12, %s639_s14 }
  0x54   :  { %p645_p1 = scmp.lt.u32.totalorder %s639_s14, %s67_s9 }
  0x55   :  { %p644_p0 = por %p643_p13, %p642_p12 }
  0x57   :  { %p646_p2 = por %p645_p1, %p644_p0 }
  0x59   :  { %p647_p3 = pnand %p646_p2, %p640_p11 }
  0x5b   :  { %650 = shalt.err (!%p647_p3)  }
  0x5c   :  { %s651_s0 = scalar_lea.vmem %s78_s11, 16  ;;  %p656_p5 = scmp.lt.s32.totalorder %s78_s11, %s1063_s24 }
  0x5d   :  { %p652_p4 = scmp.ne.s32.totalorder %s78_s11, %s651_s0  ;;  %p657_p6 = scmp.lt.s32.totalorder %s1089_s16, %s651_s0 }
  0x5f   :  { %p658_p7 = por %p657_p6, %p656_p5 }
  0x61   :  { %p659_p8 = pnand %p658_p7, %p652_p4 }
  0x63   :  { %662 = shalt.err (!%p659_p8)  }
  0x64   :  { %80 = dma.hbm_to_vmem [thread:$0]  %s67_s9, 16, %s78_s11, [#allocation3 + $0x3] }
  0x65   :  { %s1014_s18 = smov [#allocation2 + $0x4]   ;;  %s1134_s20 = sld [smem:[#allocation5 + $0x5]] }
  0x66   :  { %s94_s19 = sshll.u32 %s1014_s18, 4  ;;  %s1015_s21 = smov [#allocation2 + $0x5]   ;;  %s95_s19 = int_to_ptr.vmem [resolvable:$true] %s94_s19 }
  0x67   :  { %s111_s22 = sshll.u32 %s1015_s21, 4  ;;  %s1136_s23 = sld [smem:[#allocation5 + $0x6]]  ;;  %s1139_s22 = int_to_ptr.vmem [resolvable:$true] %s111_s22 }
  0x68   :  { %s497_s25 = sshll.u32 %s1126_s13, 4 }
  0x69   :  { %s84_s29 = scalar_lea.hbm %s1340_s1, %s497_s25 }
  0x6a   :  { %s663_s4 = scalar_lea.hbm %s84_s29, 16  ;;  %p666_p10 = scmp.lt.u32.totalorder %s84_s29, %s1340_s1 }
  0x6b   :  { %p664_p9 = scmp.ne.s32.totalorder %s84_s29, %s663_s4  ;;  %p667_p11 = scmp.lt.u32.totalorder %s1080_s12, %s663_s4 }
  0x6c   :  { %p669_p13 = scmp.lt.u32.totalorder %s663_s4, %s84_s29 }
  0x6d   :  { %p668_p12 = por %p667_p11, %p666_p10 }
  0x6f   :  { %p670_p0 = por %p669_p13, %p668_p12 }
  0x71   :  { %p671_p1 = pnand %p670_p0, %p664_p9 }
  0x73   :  { %674 = shalt.err (!%p671_p1)  }
  0x74   :  { %s675_s7 = scalar_lea.vmem %s95_s19, 16  ;;  %p680_p3 = scmp.lt.s32.totalorder %s95_s19, %s1063_s24 }
  0x75   :  { %p676_p2 = scmp.ne.s32.totalorder %s95_s19, %s675_s7  ;;  %p681_p4 = scmp.lt.s32.totalorder %s1089_s16, %s675_s7 }
  0x77   :  { %p682_p5 = por %p681_p4, %p680_p3 }
  0x79   :  { %p683_p6 = pnand %p682_p5, %p676_p2 }
  0x7b   :  { %686 = shalt.err (!%p683_p6)  }
  0x7c   :  { %97 = dma.hbm_to_vmem [thread:$0]  %s84_s29, 16, %s95_s19, [#allocation3 + $0x4] }
  0x7d   :  { %s499_s27 = sshll.u32 %s1134_s20, 4  ;;  %s1016_s30 = smov [#allocation2 + $0x6]  }
  0x7e   :  { %s128_s8 = sshll.u32 %s1016_s30, 4  ;;  %s101_s11 = scalar_lea.hbm %s1340_s1, %s499_s27  ;;  %s1154_s8 = int_to_ptr.vmem [resolvable:$true] %s128_s8 }
  0x7f   :  { %s687_s13 = scalar_lea.hbm %s101_s11, 16  ;;  %p690_p8 = scmp.lt.u32.totalorder %s101_s11, %s1340_s1 }
  0x80   :  { %p688_p7 = scmp.ne.s32.totalorder %s101_s11, %s687_s13  ;;  %p691_p9 = scmp.lt.u32.totalorder %s1080_s12, %s687_s13 }
  0x81   :  { %p693_p11 = scmp.lt.u32.totalorder %s687_s13, %s101_s11 }
  0x82   :  { %p692_p10 = por %p691_p9, %p690_p8 }
  0x84   :  { %p694_p12 = por %p693_p11, %p692_p10 }
  0x86   :  { %p695_p13 = pnand %p694_p12, %p688_p7 }
  0x88   :  { %698 = shalt.err (!%p695_p13)  }
  0x89   :  { %s699_s17 = scalar_lea.vmem %s1139_s22, 16  ;;  %p704_p1 = scmp.lt.s32.totalorder %s1139_s22, %s1063_s24 }
  0x8a   :  { %p700_p0 = scmp.ne.s32.totalorder %s1139_s22, %s699_s17  ;;  %p705_p2 = scmp.lt.s32.totalorder %s1089_s16, %s699_s17 }
  0x8c   :  { %p706_p3 = por %p705_p2, %p704_p1 }
  0x8e   :  { %p707_p4 = pnand %p706_p3, %p700_p0 }
  0x90   :  { %710 = shalt.err (!%p707_p4)  }
  0x91   :  { %114 = dma.hbm_to_vmem [thread:$0]  %s101_s11, 16, %s1139_s22, [#allocation3 + $0x5] }
  0x92   :  { %s501_s0 = sshll.u32 %s1136_s23, 4  ;;  %s1167_s18 = sld [smem:[#allocation5 + $0x7]] }
  0x93   :  { %s118_s21 = scalar_lea.hbm %s1340_s1, %s501_s0 }
  0x94   :  { %s711_s25 = scalar_lea.hbm %s118_s21, 16  ;;  %p714_p6 = scmp.lt.u32.totalorder %s118_s21, %s1340_s1 }
  0x95   :  { %p712_p5 = scmp.ne.s32.totalorder %s118_s21, %s711_s25  ;;  %p715_p7 = scmp.lt.u32.totalorder %s1080_s12, %s711_s25 }
  0x96   :  { %p717_p9 = scmp.lt.u32.totalorder %s711_s25, %s118_s21 }
  0x97   :  { %p716_p8 = por %p715_p7, %p714_p6 }
  0x99   :  { %p718_p10 = por %p717_p9, %p716_p8 }
  0x9b   :  { %p719_p11 = pnand %p718_p10, %p712_p5 }
  0x9d   :  { %722 = shalt.err (!%p719_p11)  }
  0x9e   :  { %s723_s22 = scalar_lea.vmem %s1154_s8, 16  ;;  %p728_p13 = scmp.lt.s32.totalorder %s1154_s8, %s1063_s24 }
  0x9f   :  { %p724_p12 = scmp.ne.s32.totalorder %s1154_s8, %s723_s22  ;;  %p729_p0 = scmp.lt.s32.totalorder %s1089_s16, %s723_s22 }
  0xa1   :  { %p730_p1 = por %p729_p0, %p728_p13 }
  0xa3   :  { %p731_p2 = pnand %p730_p1, %p724_p12 }
  0xa5   :  { %734 = shalt.err (!%p731_p2)  }
  0xa6   :  { %131 = dma.hbm_to_vmem [thread:$0]  %s118_s21, 16, %s1154_s8, [#allocation3 + $0x6] }
  0xa7   :  { %s1017_s23 = smov [#allocation2 + $0x7]   ;;  %s1182_s4 = sld [smem:[#allocation5 + $0x8]] }
  0xa8   :  { %s145_s29 = sshll.u32 %s1017_s23, 4  ;;  %s1018_s5 = smov [#allocation2 + $0x8]   ;;  %s146_s29 = int_to_ptr.vmem [resolvable:$true] %s145_s29 }
  0xa9   :  { %s162_s6 = sshll.u32 %s1018_s5, 4  ;;  %s1184_s7 = sld [smem:[#allocation5 + $0x9]]  ;;  %s1187_s6 = int_to_ptr.vmem [resolvable:$true] %s162_s6 }
  0xaa   :  { %s503_s27 = sshll.u32 %s1167_s18, 4 }
  0xab   :  { %s135_s10 = scalar_lea.hbm %s1340_s1, %s503_s27 }
  0xac   :  { %s735_s11 = scalar_lea.hbm %s135_s10, 16  ;;  %p738_p4 = scmp.lt.u32.totalorder %s135_s10, %s1340_s1 }
  0xad   :  { %p736_p3 = scmp.ne.s32.totalorder %s135_s10, %s735_s11  ;;  %p739_p5 = scmp.lt.u32.totalorder %s1080_s12, %s735_s11 }
  0xae   :  { %p741_p7 = scmp.lt.u32.totalorder %s735_s11, %s135_s10 }
  0xaf   :  { %p740_p6 = por %p739_p5, %p738_p4 }
  0xb1   :  { %p742_p8 = por %p741_p7, %p740_p6 }
  0xb3   :  { %p743_p9 = pnand %p742_p8, %p736_p3 }
  0xb5   :  { %746 = shalt.err (!%p743_p9)  }
  0xb6   :  { %s747_s14 = scalar_lea.vmem %s146_s29, 16  ;;  %p752_p11 = scmp.lt.s32.totalorder %s146_s29, %s1063_s24 }
  0xb7   :  { %p748_p10 = scmp.ne.s32.totalorder %s146_s29, %s747_s14  ;;  %p753_p12 = scmp.lt.s32.totalorder %s1089_s16, %s747_s14 }
  0xb9   :  { %p754_p13 = por %p753_p12, %p752_p11 }
  0xbb   :  { %p755_p0 = pnand %p754_p13, %p748_p10 }
  0xbd   :  { %758 = shalt.err (!%p755_p0)  }
  0xbe   :  { %148 = dma.hbm_to_vmem [thread:$0]  %s135_s10, 16, %s146_s29, [#allocation3 + $0x7] }
  0xbf   :  { %s505_s15 = sshll.u32 %s1182_s4, 4  ;;  %s1019_s17 = smov [#allocation2 + $0x9]  }
  0xc0   :  { %s179_s0 = sshll.u32 %s1019_s17, 4  ;;  %s152_s20 = scalar_lea.hbm %s1340_s1, %s505_s15  ;;  %s1202_s0 = int_to_ptr.vmem [resolvable:$true] %s179_s0 }
  0xc1   :  { %s759_s21 = scalar_lea.hbm %s152_s20, 16  ;;  %p762_p2 = scmp.lt.u32.totalorder %s152_s20, %s1340_s1 }
  0xc2   :  { %p760_p1 = scmp.ne.s32.totalorder %s152_s20, %s759_s21  ;;  %p763_p3 = scmp.lt.u32.totalorder %s1080_s12, %s759_s21 }
  0xc3   :  { %p765_p5 = scmp.lt.u32.totalorder %s759_s21, %s152_s20 }
  0xc4   :  { %p764_p4 = por %p763_p3, %p762_p2 }
  0xc6   :  { %p766_p6 = por %p765_p5, %p764_p4 }
  0xc8   :  { %p767_p7 = pnand %p766_p6, %p760_p1 }
  0xca   :  { %770 = shalt.err (!%p767_p7)  }
  0xcb   :  { %s771_s28 = scalar_lea.vmem %s1187_s6, 16  ;;  %p776_p9 = scmp.lt.s32.totalorder %s1187_s6, %s1063_s24 }
  0xcc   :  { %p772_p8 = scmp.ne.s32.totalorder %s1187_s6, %s771_s28  ;;  %p777_p10 = scmp.lt.s32.totalorder %s1089_s16, %s771_s28 }
  0xce   :  { %p778_p11 = por %p777_p10, %p776_p9 }
  0xd0   :  { %p779_p12 = pnand %p778_p11, %p772_p8 }
  0xd2   :  { %782 = shalt.err (!%p779_p12)  }
  0xd3   :  { %165 = dma.hbm_to_vmem [thread:$0]  %s152_s20, 16, %s1187_s6, [#allocation3 + $0x8] }
  0xd4   :  { %s507_s22 = sshll.u32 %s1184_s7, 4  ;;  %s1215_s23 = sld [smem:[#allocation5 + $0xa]] }
  0xd5   :  { %s169_s5 = scalar_lea.hbm %s1340_s1, %s507_s22 }
  0xd6   :  { %s783_s27 = scalar_lea.hbm %s169_s5, 16  ;;  %p786_p0 = scmp.lt.u32.totalorder %s169_s5, %s1340_s1 }
  0xd7   :  { %p784_p13 = scmp.ne.s32.totalorder %s169_s5, %s783_s27  ;;  %p787_p1 = scmp.lt.u32.totalorder %s1080_s12, %s783_s27 }
  0xd8   :  { %p789_p3 = scmp.lt.u32.totalorder %s783_s27, %s169_s5 }
  0xd9   :  { %p788_p2 = por %p787_p1, %p786_p0 }
  0xdb   :  { %p790_p4 = por %p789_p3, %p788_p2 }
  0xdd   :  { %p791_p5 = pnand %p790_p4, %p784_p13 }
  0xdf   :  { %794 = shalt.err (!%p791_p5)  }
  0xe0   :  { %s795_s6 = scalar_lea.vmem %s1202_s0, 16  ;;  %p800_p7 = scmp.lt.s32.totalorder %s1202_s0, %s1063_s24 }
  0xe1   :  { %p796_p6 = scmp.ne.s32.totalorder %s1202_s0, %s795_s6  ;;  %p801_p8 = scmp.lt.s32.totalorder %s1089_s16, %s795_s6 }
  0xe3   :  { %p802_p9 = por %p801_p8, %p800_p7 }
  0xe5   :  { %p803_p10 = pnand %p802_p9, %p796_p6 }
  0xe7   :  { %806 = shalt.err (!%p803_p10)  }
  0xe8   :  { %182 = dma.hbm_to_vmem [thread:$0]  %s169_s5, 16, %s1202_s0, [#allocation3 + $0x9] }
  0xe9   :  { %s1020_s7 = smov [#allocation2 + $0xa]   ;;  %s1230_s11 = sld [smem:[#allocation5 + $0xb]] }
  0xea   :  { %s196_s10 = sshll.u32 %s1020_s7, 4  ;;  %s1021_s13 = smov [#allocation2 + $0xb]   ;;  %s197_s10 = int_to_ptr.vmem [resolvable:$true] %s196_s10 }
  0xeb   :  { %s213_s8 = sshll.u32 %s1021_s13, 4  ;;  %s1232_s14 = sld [smem:[#allocation5 + $0xc]]  ;;  %s1235_s8 = int_to_ptr.vmem [resolvable:$true] %s213_s8 }
  0xec   :  { %s509_s15 = sshll.u32 %s1215_s23, 4 }
  0xed   :  { %s186_s19 = scalar_lea.hbm %s1340_s1, %s509_s15 }
  0xee   :  { %s807_s20 = scalar_lea.hbm %s186_s19, 16  ;;  %p810_p12 = scmp.lt.u32.totalorder %s186_s19, %s1340_s1 }
  0xef   :  { %p808_p11 = scmp.ne.s32.totalorder %s186_s19, %s807_s20  ;;  %p811_p13 = scmp.lt.u32.totalorder %s1080_s12, %s807_s20 }
  0xf0   :  { %p813_p1 = scmp.lt.u32.totalorder %s807_s20, %s186_s19 }
  0xf1   :  { %p812_p0 = por %p811_p13, %p810_p12 }
  0xf3   :  { %p814_p2 = por %p813_p1, %p812_p0 }
  0xf5   :  { %p815_p3 = pnand %p814_p2, %p808_p11 }
  0xf7   :  { %818 = shalt.err (!%p815_p3)  }
  0xf8   :  { %s819_s25 = scalar_lea.vmem %s197_s10, 16  ;;  %p824_p5 = scmp.lt.s32.totalorder %s197_s10, %s1063_s24 }
  0xf9   :  { %p820_p4 = scmp.ne.s32.totalorder %s197_s10, %s819_s25  ;;  %p825_p6 = scmp.lt.s32.totalorder %s1089_s16, %s819_s25 }
  0xfb   :  { %p826_p7 = por %p825_p6, %p824_p5 }
  0xfd   :  { %p827_p8 = pnand %p826_p7, %p820_p4 }
  0xff   :  { %830 = shalt.err (!%p827_p8)  }
 0x100   :  { %199 = dma.hbm_to_vmem [thread:$0]  %s186_s19, 16, %s197_s10, [#allocation3 + $0xa] }
 0x101   :  { %s511_s26 = sshll.u32 %s1230_s11, 4  ;;  %s1022_s28 = smov [#allocation2 + $0xc]  }
 0x102   :  { %s230_s22 = sshll.u32 %s1022_s28, 4  ;;  %s203_s4 = scalar_lea.hbm %s1340_s1, %s511_s26  ;;  %s1250_s22 = int_to_ptr.vmem [resolvable:$true] %s230_s22 }
 0x103   :  { %s831_s5 = scalar_lea.hbm %s203_s4, 16  ;;  %p834_p10 = scmp.lt.u32.totalorder %s203_s4, %s1340_s1 }
 0x104   :  { %p832_p9 = scmp.ne.s32.totalorder %s203_s4, %s831_s5  ;;  %p835_p11 = scmp.lt.u32.totalorder %s1080_s12, %s831_s5 }
 0x105   :  { %p837_p13 = scmp.lt.u32.totalorder %s831_s5, %s203_s4 }
 0x106   :  { %p836_p12 = por %p835_p11, %p834_p10 }
 0x108   :  { %p838_p0 = por %p837_p13, %p836_p12 }
 0x10a   :  { %p839_p1 = pnand %p838_p0, %p832_p9 }
 0x10c   :  { %842 = shalt.err (!%p839_p1)  }
 0x10d   :  { %s843_s9 = scalar_lea.vmem %s1235_s8, 16  ;;  %p848_p3 = scmp.lt.s32.totalorder %s1235_s8, %s1063_s24 }
 0x10e   :  { %p844_p2 = scmp.ne.s32.totalorder %s1235_s8, %s843_s9  ;;  %p849_p4 = scmp.lt.s32.totalorder %s1089_s16, %s843_s9 }
 0x110   :  { %p850_p5 = por %p849_p4, %p848_p3 }
 0x112   :  { %p851_p6 = pnand %p850_p5, %p844_p2 }
 0x114   :  { %854 = shalt.err (!%p851_p6)  }
 0x115   :  { %216 = dma.hbm_to_vmem [thread:$0]  %s203_s4, 16, %s1235_s8, [#allocation3 + $0xb] }
 0x116   :  { %s513_s6 = sshll.u32 %s1232_s14, 4  ;;  %s1263_s7 = sld [smem:[#allocation5 + $0xd]] }
 0x117   :  { %s220_s13 = scalar_lea.hbm %s1340_s1, %s513_s6 }
 0x118   :  { %s855_s15 = scalar_lea.hbm %s220_s13, 16  ;;  %p858_p8 = scmp.lt.u32.totalorder %s220_s13, %s1340_s1 }
 0x119   :  { %p856_p7 = scmp.ne.s32.totalorder %s220_s13, %s855_s15  ;;  %p859_p9 = scmp.lt.u32.totalorder %s1080_s12, %s855_s15 }
 0x11a   :  { %p861_p11 = scmp.lt.u32.totalorder %s855_s15, %s220_s13 }
 0x11b   :  { %p860_p10 = por %p859_p9, %p858_p8 }
 0x11d   :  { %p862_p12 = por %p861_p11, %p860_p10 }
 0x11f   :  { %p863_p13 = pnand %p862_p12, %p856_p7 }
 0x121   :  { %866 = shalt.err (!%p863_p13)  }
 0x122   :  { %s867_s8 = scalar_lea.vmem %s1250_s22, 16  ;;  %p872_p1 = scmp.lt.s32.totalorder %s1250_s22, %s1063_s24 }
 0x123   :  { %p868_p0 = scmp.ne.s32.totalorder %s1250_s22, %s867_s8  ;;  %p873_p2 = scmp.lt.s32.totalorder %s1089_s16, %s867_s8 }
 0x125   :  { %p874_p3 = por %p873_p2, %p872_p1 }
 0x127   :  { %p875_p4 = pnand %p874_p3, %p868_p0 }
 0x129   :  { %878 = shalt.err (!%p875_p4)  }
 0x12a   :  { %233 = dma.hbm_to_vmem [thread:$0]  %s220_s13, 16, %s1250_s22, [#allocation3 + $0xc] }
 0x12b   :  { %s1023_s14 = smov [#allocation2 + $0xd]   ;;  %s1278_s20 = sld [smem:[#allocation5 + $0xe]] }
 0x12c   :  { %s247_s19 = sshll.u32 %s1023_s14, 4  ;;  %s1024_s21 = smov [#allocation2 + $0xe]   ;;  %s248_s19 = int_to_ptr.vmem [resolvable:$true] %s247_s19 }
 0x12d   :  { %s264_s0 = sshll.u32 %s1024_s21, 4  ;;  %s1280_s25 = sld [smem:[#allocation5 + $0xf]]  ;;  %s1283_s0 = int_to_ptr.vmem [resolvable:$true] %s264_s0 }
 0x12e   :  { %s515_s26 = sshll.u32 %s1263_s7, 4 }
 0x12f   :  { %s237_s29 = scalar_lea.hbm %s1340_s1, %s515_s26 }
 0x130   :  { %s879_s4 = scalar_lea.hbm %s237_s29, 16  ;;  %p882_p6 = scmp.lt.u32.totalorder %s237_s29, %s1340_s1 }
 0x131   :  { %p880_p5 = scmp.ne.s32.totalorder %s237_s29, %s879_s4  ;;  %p883_p7 = scmp.lt.u32.totalorder %s1080_s12, %s879_s4 }
 0x132   :  { %p885_p9 = scmp.lt.u32.totalorder %s879_s4, %s237_s29 }
 0x133   :  { %p884_p8 = por %p883_p7, %p882_p6 }
 0x135   :  { %p886_p10 = por %p885_p9, %p884_p8 }
 0x137   :  { %p887_p11 = pnand %p886_p10, %p880_p5 }
 0x139   :  { %890 = shalt.err (!%p887_p11)  }
 0x13a   :  { %s891_s27 = scalar_lea.vmem %s248_s19, 16  ;;  %p896_p13 = scmp.lt.s32.totalorder %s248_s19, %s1063_s24 }
 0x13b   :  { %p892_p12 = scmp.ne.s32.totalorder %s248_s19, %s891_s27  ;;  %p897_p0 = scmp.lt.s32.totalorder %s1089_s16, %s891_s27 }
 0x13d   :  { %p898_p1 = por %p897_p0, %p896_p13 }
 0x13f   :  { %p899_p2 = pnand %p898_p1, %p892_p12 }
 0x141   :  { %902 = shalt.err (!%p899_p2)  }
 0x142   :  { %250 = dma.hbm_to_vmem [thread:$0]  %s237_s29, 16, %s248_s19, [#allocation3 + $0xd] }
 0x143   :  { %s517_s30 = sshll.u32 %s1278_s20, 4  ;;  %s1025_s9 = smov [#allocation2 + $0xf]  }
 0x144   :  { %s281_s6 = sshll.u32 %s1025_s9, 4  ;;  %s254_s11 = scalar_lea.hbm %s1340_s1, %s517_s30  ;;  %s1298_s6 = int_to_ptr.vmem [resolvable:$true] %s281_s6 }
 0x145   :  { %s903_s13 = scalar_lea.hbm %s254_s11, 16  ;;  %p906_p4 = scmp.lt.u32.totalorder %s254_s11, %s1340_s1 }
 0x146   :  { %p904_p3 = scmp.ne.s32.totalorder %s254_s11, %s903_s13  ;;  %p907_p5 = scmp.lt.u32.totalorder %s1080_s12, %s903_s13 }
 0x147   :  { %p909_p7 = scmp.lt.u32.totalorder %s903_s13, %s254_s11 }
 0x148   :  { %p908_p6 = por %p907_p5, %p906_p4 }
 0x14a   :  { %p910_p8 = por %p909_p7, %p908_p6 }
 0x14c   :  { %p911_p9 = pnand %p910_p8, %p904_p3 }
 0x14e   :  { %914 = shalt.err (!%p911_p9)  }
 0x14f   :  { %s915_s18 = scalar_lea.vmem %s1283_s0, 16  ;;  %p920_p11 = scmp.lt.s32.totalorder %s1283_s0, %s1063_s24 }
 0x150   :  { %p916_p10 = scmp.ne.s32.totalorder %s1283_s0, %s915_s18  ;;  %p921_p12 = scmp.lt.s32.totalorder %s1089_s16, %s915_s18 }
 0x152   :  { %p922_p13 = por %p921_p12, %p920_p11 }
 0x154   :  { %p923_p0 = pnand %p922_p13, %p916_p10 }
 0x156   :  { %926 = shalt.err (!%p923_p0)  }
 0x157   :  { %267 = dma.hbm_to_vmem [thread:$0]  %s254_s11, 16, %s1283_s0, [#allocation3 + $0xe] }
 0x158   :  { %s519_s8 = sshll.u32 %s1280_s25, 4 }
 0x159   :  { %s271_s20 = scalar_lea.hbm %s1340_s1, %s519_s8 }
 0x15a   :  { %s927_s21 = scalar_lea.hbm %s271_s20, 16  ;;  %p930_p2 = scmp.lt.u32.totalorder %s271_s20, %s1340_s1 }
 0x15b   :  { %p928_p1 = scmp.ne.s32.totalorder %s271_s20, %s927_s21  ;;  %p931_p3 = scmp.lt.u32.totalorder %s1080_s12, %s927_s21 }
 0x15c   :  { %p933_p5 = scmp.lt.u32.totalorder %s927_s21, %s271_s20 }
 0x15d   :  { %p932_p4 = por %p931_p3, %p930_p2 }
 0x15f   :  { %p934_p6 = por %p933_p5, %p932_p4 }
 0x161   :  { %p935_p7 = pnand %p934_p6, %p928_p1 }
 0x163   :  { %938 = shalt.err (!%p935_p7)  }
 0x164   :  { %s939_s0 = scalar_lea.vmem %s1298_s6, 16  ;;  %p944_p9 = scmp.lt.s32.totalorder %s1298_s6, %s1063_s24 }
 0x165   :  { %p940_p8 = scmp.ne.s32.totalorder %s1298_s6, %s939_s0  ;;  %p945_p10 = scmp.lt.s32.totalorder %s1089_s16, %s939_s0 }
 0x167   :  { %p946_p11 = por %p945_p10, %p944_p9 }
 0x169   :  { %p947_p12 = pnand %p946_p11, %p940_p8 }
 0x16b   :  { %950 = shalt.err (!%p947_p12)  }
 0x16c   :  { %284 = dma.hbm_to_vmem [thread:$0]  %s271_s20, 16, %s1298_s6, [#allocation3 + $0xf] }
 0x16d   :  { %975 = dma.done.wait [#allocation3], 16 }
 0x16e   :  { %976 = vsyncadd [#allocation3], 4294967280 }
 0x16f   :  { %977 = dma.done.wait [#allocation3 + $0x1], 16 }
 0x170   :  { %978 = vsyncadd [#allocation3 + $0x1], 4294967280 }
 0x171   :  { %979 = dma.done.wait [#allocation3 + $0x2], 16 }
 0x172   :  { %980 = vsyncadd [#allocation3 + $0x2], 4294967280 }
 0x173   :  { %981 = dma.done.wait [#allocation3 + $0x3], 16 }
 0x174   :  { %982 = vsyncadd [#allocation3 + $0x3], 4294967280 }
 0x175   :  { %983 = dma.done.wait [#allocation3 + $0x4], 16 }
 0x176   :  { %984 = vsyncadd [#allocation3 + $0x4], 4294967280 }
 0x177   :  { %985 = dma.done.wait [#allocation3 + $0x5], 16 }
 0x178   :  { %986 = vsyncadd [#allocation3 + $0x5], 4294967280 }
 0x179   :  { %987 = dma.done.wait [#allocation3 + $0x6], 16 }
 0x17a   :  { %988 = vsyncadd [#allocation3 + $0x6], 4294967280 }
 0x17b   :  { %989 = dma.done.wait [#allocation3 + $0x7], 16 }
 0x17c   :  { %990 = vsyncadd [#allocation3 + $0x7], 4294967280 }
 0x17d   :  { %991 = dma.done.wait [#allocation3 + $0x8], 16 }
 0x17e   :  { %992 = vsyncadd [#allocation3 + $0x8], 4294967280 }
 0x17f   :  { %993 = dma.done.wait [#allocation3 + $0x9], 16 }
 0x180   :  { %994 = vsyncadd [#allocation3 + $0x9], 4294967280 }
 0x181   :  { %995 = dma.done.wait [#allocation3 + $0xa], 16 }
 0x182   :  { %996 = vsyncadd [#allocation3 + $0xa], 4294967280 }
 0x183   :  { %997 = dma.done.wait [#allocation3 + $0xb], 16 }
 0x184   :  { %998 = vsyncadd [#allocation3 + $0xb], 4294967280 }
 0x185   :  { %999 = dma.done.wait [#allocation3 + $0xc], 16 }
 0x186   :  { %1000 = vsyncadd [#allocation3 + $0xc], 4294967280 }
 0x187   :  { %1001 = dma.done.wait [#allocation3 + $0xd], 16 }
 0x188   :  { %1002 = vsyncadd [#allocation3 + $0xd], 4294967280 }
 0x189   :  { %1003 = dma.done.wait [#allocation3 + $0xe], 16 }
 0x18a   :  { %1004 = vsyncadd [#allocation3 + $0xe], 4294967280 }
 0x18b   :  { %1005 = dma.done.wait [#allocation3 + $0xf], 16 }
 0x18c   :  { %1006 = vsyncadd [#allocation3 + $0xf], 4294967280  ;;  %s1026_s1 = smov [#allocation6]   ;;  %v317_v0 = vld [vmem:[#allocation2] sm:$0xff]  ;;  %v318_v2 = vld [vmem:[#allocation2 + $0x8] sm:$0xff] }
 0x18d   :  { %s335_s24 = sshll.u32 %s1026_s1, 4  ;;  %v520_v1 = vld [vmem:[%s1341_s2] ss:$0 sm:$0xff]  ;;  %s336_s24 = int_to_ptr.vmem [resolvable:$true] %s335_s24 }
 0x18e   :  { %v326_v3 = vadd.f32 %v520_v1, %v317_v0  ;;  %v327_v4 = vadd.f32 %v520_v1, %v318_v2  ;;  %s951_s25 = scalar_lea.vmem %s336_s24, 256  ;;  %p956_p0 = scmp.lt.s32.totalorder %s336_s24, %s336_s24 }
 0x18f   :  { %p952_p13 = scmp.ne.s32.totalorder %s336_s24, %s951_s25  ;;  %p957_p1 = scmp.lt.s32.totalorder %s951_s25, %s951_s25 }
 0x190   :  { %328 = vst [vmem:[#allocation6] sm:$0xff] %v326_v3  ;;  %329 = vst [vmem:[#allocation6 + $0x8] sm:$0xff] %v327_v4 }
 0x191   :  { %p958_p2 = por %p957_p1, %p956_p0 }
 0x193   :  { %p959_p3 = pnand %p958_p2, %p952_p13 }
 0x195   :  { %962 = shalt.err (!%p959_p3)
}
 0x196   :  { %s963_s4 = scalar_lea.hbm %s1342_s3, 256 }
 0x197   :  { %p964_p4 = scmp.ne.s32.totalorder %s1342_s3, %s963_s4  ;;  %p967_p5 = scmp.lt.u32.totalorder %s963_s4, %s1342_s3 }
 0x199   :  { %p969_p6 = pnand %p967_p5, %p964_p4 }
 0x19b   :  { %972 = shalt.err (!%p969_p6)
}
 0x19c   :  { %s1027_s30 = smov 128   ;;  %s1028_s9 = smov 8  }
 0x19d   :  { %341 = dma.vmem_to_hbm [thread:$0]  %s336_s24, 256, %s1342_s3, [#allocation7], %s1027_s30, %s1027_s30, %s1028_s9  }
 0x19e   :  { %1007 = dma.done.wait [#allocation7], 256  }
 0x19f   :  { %1008 = vsyncadd [#allocation7], 4294967040 }
 0x1a0   :  { %345 = vsyncpa [#allocation7], 1 }
 0x1a1   :  { %346 = vsyncmov [#allocation3] }
 0x1a4   :  { %s347_s10 = vpop.sfrf %346 }
 0x1a5   :  { %p521_p7 = scmp.ne.s32.totalorder %s347_s10, 0 }
 0x1a7   :  { %351 = shalt.err (%p521_p7)  }
 0x1a8   :  { %353 = vsyncmov [#allocation3 + $0x1] }
 0x1ab   :  { %s354_s11 = vpop.sfrf %353 }
 0x1ac   :  { %p522_p8 = scmp.ne.s32.totalorder %s354_s11, 0 }
 0x1ae   :  { %358 = shalt.err (%p522_p8)  }
 0x1af   :  { %360 = vsyncmov [#allocation3 + $0x2] }
 0x1b2   :  { %s361_s13 = vpop.sfrf %360 }
 0x1b3   :  { %p523_p9 = scmp.ne.s32.totalorder %s361_s13, 0 }
 0x1b5   :  { %365 = shalt.err (%p523_p9)  }
 0x1b6   :  { %367 = vsyncmov [#allocation3 + $0x3] }
 0x1b9   :  { %s368_s15 = vpop.sfrf %367 }
 0x1ba   :  { %p524_p10 = scmp.ne.s32.totalorder %s368_s15, 0 }
 0x1bc   :  { %372 = shalt.err (%p524_p10)  }
 0x1bd   :  { %374 = vsyncmov [#allocation3 + $0x4] }
 0x1c0   :  { %s375_s3 = vpop.sfrf %374 }
 0x1c1   :  { %p525_p11 = scmp.ne.s32.totalorder %s375_s3, 0 }
 0x1c3   :  { %379 = shalt.err (%p525_p11)  }
 0x1c4   :  { %381 = vsyncmov [#allocation3 + $0x5] }
 0x1c7   :  { %s382_s17 = vpop.sfrf %381 }
 0x1c8   :  { %p526_p12 = scmp.ne.s32.totalorder %s382_s17, 0 }
 0x1ca   :  { %386 = shalt.err (%p526_p12)  }
 0x1cb   :  { %388 = vsyncmov [#allocation3 + $0x6] }
 0x1ce   :  { %s389_s18 = vpop.sfrf %388 }
 0x1cf   :  { %p527_p13 = scmp.ne.s32.totalorder %s389_s18, 0 }
 0x1d1   :  { %393 = shalt.err (%p527_p13)  }
 0x1d2   :  { %395 = vsyncmov [#allocation3 + $0x7] }
 0x1d5   :  { %s396_s8 = vpop.sfrf %395 }
 0x1d6   :  { %p528_p0 = scmp.ne.s32.totalorder %s396_s8, 0 }
 0x1d8   :  { %400 = shalt.err (%p528_p0)  }
 0x1d9   :  { %402 = vsyncmov [#allocation3 + $0x8] }
 0x1dc   :  { %s403_s14 = vpop.sfrf %402 }
 0x1dd   :  { %p529_p1 = scmp.ne.s32.totalorder %s403_s14, 0 }
 0x1df   :  { %407 = shalt.err (%p529_p1)  }
 0x1e0   :  { %409 = vsyncmov [#allocation3 + $0x9] }
 0x1e3   :  { %s410_s19 = vpop.sfrf %409 }
 0x1e4   :  { %p530_p2 = scmp.ne.s32.totalorder %s410_s19, 0 }
 0x1e6   :  { %414 = shalt.err (%p530_p2)  }
 0x1e7   :  { %416 = vsyncmov [#allocation3 + $0xa] }
 0x1ea   :  { %s417_s20 = vpop.sfrf %416 }
 0x1eb   :  { %p531_p3 = scmp.ne.s32.totalorder %s417_s20, 0 }
 0x1ed   :  { %421 = shalt.err (%p531_p3)  }
 0x1ee   :  { %423 = vsyncmov [#allocation3 + $0xb] }
 0x1f1   :  { %s424_s21 = vpop.sfrf %423 }
 0x1f2   :  { %p532_p4 = scmp.ne.s32.totalorder %s424_s21, 0 }
 0x1f4   :  { %428 = shalt.err (%p532_p4)  }
 0x1f5   :  { %430 = vsyncmov [#allocation3 + $0xc] }
 0x1f8   :  { %s431_s26 = vpop.sfrf %430 }
 0x1f9   :  { %p533_p5 = scmp.ne.s32.totalorder %s431_s26, 0 }
 0x1fb   :  { %435 = shalt.err (%p533_p5)  }
 0x1fc   :  { %437 = vsyncmov [#allocation3 + $0xd] }
 0x1ff   :  { %s438_s28 = vpop.sfrf %437 }
 0x200   :  { %p534_p6 = scmp.ne.s32.totalorder %s438_s28, 0 }
 0x202   :  { %442 = shalt.err (%p534_p6)  }
 0x203   :  { %444 = vsyncmov [#allocation3 + $0xe] }
 0x206   :  { %s445_s0 = vpop.sfrf %444 }
 0x207   :  { %p535_p7 = scmp.ne.s32.totalorder %s445_s0, 0 }
 0x209   :  { %449 = shalt.err (%p535_p7)  }
 0x20a   :  { %451 = vsyncmov [#allocation3 + $0xf] }
 0x20d   :  { %s452_s1 = vpop.sfrf %451 }
 0x20e   :  { %p536_p8 = scmp.ne.s32.totalorder %s452_s1, 0 }
 0x210   :  { %456 = shalt.err (%p536_p8)  }

</bundles_post_ra>
